<compile_context>
chip_gen: v7x
topology: tpu7x:2x2x1
jax: 0.10.0
libtpu: 0.0.40
codegen_flags: <defaults>
</compile_context>

<pallas_src>
import functools

import jax
import jax.numpy as jnp
import numpy as np
from jax.experimental import pallas as pl
from jax.experimental.pallas import tpu as pltpu


def _round_up(x, m):
    return (x + m - 1) // m * m


# ---------------------------------------------------------------------------
# Fused kernel (one grid step per sample):
#   in-kernel tap gather -> one (Cout,Kdim)@(Kdim,Lt) dot per L-tile
#   -> masked sum/sumsq accumulation -> in-place InstanceNorm + LeakyReLU sweep
# ---------------------------------------------------------------------------
def _fused_deconv_in_lrelu_kernel(xf_ref, w_ref, mask_ref, o_ref, patch_ref, *,
                                  cin, taps, wp, lt, n_tiles, eps, slope,
                                  inv_count):
    # xf_ref:    (Cin, Lf)       compute dtype, flattened padded+dilated input
    # w_ref:     (Cout, Kdim)    compute dtype, taps-major flattened weights
    # mask_ref:  (1, Ly)         f32, 1.0 on valid output columns
    # o_ref:     (Cout, Ly)      f32 output block (resident for the whole step)
    # patch_ref: (Kdim, Lt)      compute dtype VMEM scratch (gathered taps)
    cout = w_ref.shape[0]
    sum_acc = jnp.zeros((cout, 1), jnp.float32)
    sq_acc = jnp.zeros((cout, 1), jnp.float32)

    # ---- pass 1: gather all taps, one MXU dot per L-tile, park raw y in o_ref
    for t in range(n_tiles):
        l0 = t * lt
        for ti, (kh, kw) in enumerate(taps):
            off = kh * wp + kw + l0                     # contiguous lane slice
            patch_ref[ti * cin:(ti + 1) * cin, :] = xf_ref[:, off:off + lt]
        y = jnp.dot(w_ref[...], patch_ref[...],
                    preferred_element_type=jnp.float32)  # (Cout, Lt) f32
        m = mask_ref[:, l0:l0 + lt]                      # 0/1 valid-column mask
        ym = y * m
        sum_acc = sum_acc + jnp.sum(ym, axis=-1, keepdims=True)
        sq_acc = sq_acc + jnp.sum(ym * ym, axis=-1, keepdims=True)
        o_ref[:, l0:l0 + lt] = y

    # ---- per-(sample, channel) InstanceNorm stats (biased variance, f32) ----
    mean = sum_acc * inv_count
    var = sq_acc * inv_count - mean * mean
    scale = jax.lax.rsqrt(var + eps)

    # ---- pass 2: normalize + LeakyReLU in-place on the resident output block
    for t in range(n_tiles):
        l0 = t * lt
        y = o_ref[:, l0:l0 + lt]
        xn = (y - mean) * scale
        o_ref[:, l0:l0 + lt] = jnp.maximum(xn, slope * xn)


# ---------------------------------------------------------------------------
# deconvblock forward
# ---------------------------------------------------------------------------
def deconvblock_forward(x, weight, bias=None, *, stride, padding,
                        eps=1e-5, negative_slope=0.2,
                        compute_dtype=jnp.bfloat16,
                        patch_scratch_bytes=4 * 1024 * 1024):
    """x: (N, Cin, H, W); weight: (Cin, Cout, KH, KW) [ConvTranspose2d layout];
    bias: accepted for API parity but mathematically cancelled by InstanceNorm.
    Returns (N, Cout, OH, OW) float32."""
    del bias  # per-channel constant before InstanceNorm(affine=False) cancels exactly
    N, Cin, H, W = x.shape
    assert weight.shape[0] == Cin
    _, Cout, KH, KW = weight.shape
    assert padding <= KH - 1 and padding <= KW - 1, "padding > kernel_size-1 unsupported"
    OH = (H - 1) * stride - 2 * padding + KH
    OW = (W - 1) * stride - 2 * padding + KW

    # transposed conv == dilate-by-stride + pad(K-1-padding) + conv w/ flipped kernel
    Hd = (H - 1) * stride + 1
    Wd = (W - 1) * stride + 1
    ph = KH - 1 - padding
    pw = KW - 1 - padding
    Hp, Wp = Hd + 2 * ph, Wd + 2 * pw
    xd = jnp.zeros((N, Cin, Hd, Wd), x.dtype).at[:, :, ::stride, ::stride].set(x)
    xp = jnp.pad(xd, ((0, 0), (0, 0), (ph, ph), (pw, pw)))

    Kdim = Cin * KH * KW
    esize = jnp.dtype(compute_dtype).itemsize

    # L-tile size: multiple of 128 lanes, bounded so the (Kdim, Lt) patch scratch
    # (plus double-buffered input/output blocks) stays well inside v7x's VMEM.
    lt_cap = max(128, (patch_scratch_bytes // (Kdim * esize)) // 128 * 128)
    Lt = min(lt_cap, _round_up(OH * Wp, 128))
    n_tiles = -(-(OH * Wp) // Lt)
    Ly = n_tiles * Lt                                       # padded flat output length
    Lf = _round_up((KH - 1) * Wp + (KW - 1) + Ly, 128)      # flat input length needed

    # Flatten spatial dims so every (kh,kw) tap becomes a CONTIGUOUS lane slice of
    # the per-sample input; pad flat length so all in-kernel slices stay in-bounds.
    xf = xp.reshape(N, Cin, Hp * Wp)
    xf = jnp.pad(xf, ((0, 0), (0, 0), (0, Lf - Hp * Wp)))
    xf = xf.astype(compute_dtype)            # bf16 operand: halves the dominant HBM read

    # forward-conv weight, flattened taps-major (kh, kw, ci) to match the patch rows
    w_conv = jnp.flip(weight, axis=(2, 3)).transpose(1, 0, 2, 3)       # (Cout,Cin,KH,KW)
    w_mat = w_conv.transpose(0, 2, 3, 1).reshape(Cout, Kdim).astype(compute_dtype)

    # 0/1 mask of valid output columns in the flattened layout (p = oh*Wp + ow, ow < OW)
    pos = np.arange(Ly)
    mask_np = ((pos % Wp < OW) & (pos < OH * Wp)).astype(np.float32)
    mask = jnp.asarray(mask_np).reshape(1, Ly)

    taps = tuple((kh, kw) for kh in range(KH) for kw in range(KW))
    kernel = functools.partial(
        _fused_deconv_in_lrelu_kernel, cin=Cin, taps=taps, wp=Wp, lt=Lt,
        n_tiles=n_tiles, eps=eps, slope=negative_slope,
        inv_count=1.0 / float(OH * OW))

    # explicit VMEM budget (double-buffered xf / out blocks + resident weights/mask
    # + patch scratch), clamped to a value that is safe on every TPU generation
    vmem_est = (2 * Cin * Lf * esize + Cout * Kdim * esize + 4 * Ly
                + 2 * Cout * Ly * 4 + Kdim * Lt * esize)
    vmem_limit = int(min(max(4 * vmem_est, 32 * 1024 * 1024), 56 * 1024 * 1024))

    out = pl.pallas_call(
        kernel,
        out_shape=jax.ShapeDtypeStruct((N, Cout, Ly), jnp.float32),
        grid=(N,),
        in_specs=[
            pl.BlockSpec((None, Cin, Lf), lambda n: (n, 0, 0)),   # per-sample flat input
            pl.BlockSpec((Cout, Kdim), lambda n: (0, 0)),         # weights (resident)
            pl.BlockSpec((1, Ly), lambda n: (0, 0)),              # valid-column mask
        ],
        out_specs=pl.BlockSpec((None, Cout, Ly), lambda n: (n, 0, 0)),   # lane-dense
        scratch_shapes=[pltpu.VMEM((Kdim, Lt), compute_dtype)],
        compiler_params=pltpu.CompilerParams(
            dimension_semantics=("parallel",),
            vmem_limit_bytes=vmem_limit),
    )(xf, w_mat, mask)

    # drop garbage columns: valid output sits at flat index oh*Wp + ow with ow < OW
    return out[:, :, :OH * Wp].reshape(N, Cout, OH, Wp)[:, :, :, :OW]


_deconvblock_jit = jax.jit(
    deconvblock_forward,
    static_argnames=("stride", "padding", "eps", "negative_slope",
                     "compute_dtype", "patch_scratch_bytes"))


# ---------------------------------------------------------------------------
# Pure-JAX reference (full PyTorch semantics, INCLUDING the bias, to validate
# that dropping the bias in the kernel is a no-op under InstanceNorm)
# ---------------------------------------------------------------------------
def _reference(x, weight, bias, *, stride, padding):
    KH = weight.shape[2]
    w_conv = jnp.flip(weight, axis=(2, 3)).transpose(1, 0, 2, 3)  # (Cout,Cin,KH,KW)
    y = jax.lax.conv_general_dilated(
        x, w_conv, window_strides=(1, 1),
        padding=[(KH - 1 - padding, KH - 1 - padding)] * 2,
        lhs_dilation=(stride, stride),
        dimension_numbers=("NCHW", "OIHW", "NCHW"))
    y = y + bias.reshape(1, -1, 1, 1)
    mean = y.mean(axis=(2, 3), keepdims=True)
    var = ((y - mean) ** 2).mean(axis=(2, 3), keepdims=True)
    yn = (y - mean) / jnp.sqrt(var + 1e-5)
    return jnp.where(yn >= 0, yn, 0.2 * yn)


if __name__ == "__main__":
    # deconvblock(input_dim=4, output_dim=8, kernel_size=4, stride=2, padding=1, norm='in')
    N, Cin, H, W = 2, 4, 16, 16
    Cout, K, stride, padding = 8, 4, 2, 1          # -> OH = OW = 32

    key = jax.random.PRNGKey(0)
    kx, kw, kb = jax.random.split(key, 3)
    x = jax.random.normal(kx, (N, Cin, H, W), dtype=jnp.float32)
    # ConvTranspose2d weight layout: (in_channels, out_channels, KH, KW)
    weight = 0.05 * jax.random.normal(kw, (Cin, Cout, K, K), dtype=jnp.float32)
    bias = 0.05 * jax.random.normal(kb, (Cout,), dtype=jnp.float32)

    ref = jax.block_until_ready(
        _reference(x, weight, bias, stride=stride, padding=padding))

    # f32 MXU path — tight tolerance
    out_f32 = jax.block_until_ready(
        _deconvblock_jit(x, weight, bias, stride=stride, padding=padding,
                         compute_dtype=jnp.float32))
    np.testing.assert_allclose(np.asarray(out_f32), np.asarray(ref),
                               rtol=1e-4, atol=1e-4)

    # bf16 MXU operands (f32 accumulation) — the default fast path
    out_bf16 = jax.block_until_ready(
        _deconvblock_jit(x, weight, bias, stride=stride, padding=padding))
    np.testing.assert_allclose(np.asarray(out_bf16), np.asarray(ref),
                               rtol=5e-2, atol=5e-2)

    print("KERNEL_OK")
</pallas_src>

<mosaic_0001>
module attributes {stable_mosaic.version = 11 : i64} {
  func.func @_fused_deconv_in_lrelu_kernel(%arg0: i32, %arg1: memref<1x4x1280xf32, #tpu.memory_space<vmem>>, %arg2: memref<8x64xf32, #tpu.memory_space<vmem>>, %arg3: memref<1x1152xf32, #tpu.memory_space<vmem>>, %arg4: memref<1x8x1152xf32, #tpu.memory_space<vmem>>, %arg5: memref<64x1152xf32, #tpu.memory_space<vmem>>) attributes {dimension_semantics = [#tpu.dimension_semantics<parallel>], iteration_bounds = array<i64: 2>, scalar_prefetch = 0 : i64, scratch_operands = 1 : i64, tpu.core_type = #tpu.core_type<tc>, window_params = [{transform_indices = @transform_0, window_bounds = array<i64: 1, 4, 1280>}, {pipeline_mode = #tpu.pipeline_mode<synchronous>, transform_indices = @transform_1, window_bounds = array<i64: 8, 64>}, {pipeline_mode = #tpu.pipeline_mode<synchronous>, transform_indices = @transform_2, window_bounds = array<i64: 1, 1152>}, {transform_indices = @transform_3, window_bounds = array<i64: 1, 8, 1152>}]} {
    %cst = arith.constant 0.000000e+00 : f32
    %0 = vector.broadcast %cst : f32 to vector<8x1xf32>
    %cst_0 = arith.constant 0.000000e+00 : f32
    %1 = vector.broadcast %cst_0 : f32 to vector<8x1xf32>
    %c0 = arith.constant 0 : index
    %c0_1 = arith.constant 0 : index
    %c0_2 = arith.constant 0 : index
    %2 = vector.load %arg1[%c0, %c0_1, %c0_2] : memref<1x4x1280xf32, #tpu.memory_space<vmem>>, vector<1x4x1152xf32>
    %3 = vector.shape_cast %2 : vector<1x4x1152xf32> to vector<4x1152xf32>
    %c0_3 = arith.constant 0 : index
    %c0_4 = arith.constant 0 : index
    %4 = vector.load %arg5[%c0_3, %c0_4] : memref<64x1152xf32, #tpu.memory_space<vmem>>, vector<4x1152xf32>
    tpu.vector_store %arg5[%c0_3, %c0_4], %3 {strides = array<i32>} : memref<64x1152xf32, #tpu.memory_space<vmem>>, vector<4x1152xf32>,
    %c0_5 = arith.constant 0 : index
    %c0_6 = arith.constant 0 : index
    %c1 = arith.constant 1 : index
    %5 = vector.load %arg1[%c0_5, %c0_6, %c1] : memref<1x4x1280xf32, #tpu.memory_space<vmem>>, vector<1x4x1152xf32>
    %6 = vector.shape_cast %5 : vector<1x4x1152xf32> to vector<4x1152xf32>
    %c4 = arith.constant 4 : index
    %c0_7 = arith.constant 0 : index
    %7 = vector.load %arg5[%c4, %c0_7] : memref<64x1152xf32, #tpu.memory_space<vmem>>, vector<4x1152xf32>
    tpu.vector_store %arg5[%c4, %c0_7], %6 {strides = array<i32>} : memref<64x1152xf32, #tpu.memory_space<vmem>>, vector<4x1152xf32>,
    %c0_8 = arith.constant 0 : index
    %c0_9 = arith.constant 0 : index
    %c2 = arith.constant 2 : index
    %8 = vector.load %arg1[%c0_8, %c0_9, %c2] : memref<1x4x1280xf32, #tpu.memory_space<vmem>>, vector<1x4x1152xf32>
    %9 = vector.shape_cast %8 : vector<1x4x1152xf32> to vector<4x1152xf32>
    %c8 = arith.constant 8 : index
    %c0_10 = arith.constant 0 : index
    %10 = vector.load %arg5[%c8, %c0_10] : memref<64x1152xf32, #tpu.memory_space<vmem>>, vector<4x1152xf32>
    tpu.vector_store %arg5[%c8, %c0_10], %9 {strides = array<i32>} : memref<64x1152xf32, #tpu.memory_space<vmem>>, vector<4x1152xf32>,
    %c0_11 = arith.constant 0 : index
    %c0_12 = arith.constant 0 : index
    %c3 = arith.constant 3 : index
    %11 = vector.load %arg1[%c0_11, %c0_12, %c3] : memref<1x4x1280xf32, #tpu.memory_space<vmem>>, vector<1x4x1152xf32>
    %12 = vector.shape_cast %11 : vector<1x4x1152xf32> to vector<4x1152xf32>
    %c12 = arith.constant 12 : index
    %c0_13 = arith.constant 0 : index
    %13 = vector.load %arg5[%c12, %c0_13] : memref<64x1152xf32, #tpu.memory_space<vmem>>, vector<4x1152xf32>
    tpu.vector_store %arg5[%c12, %c0_13], %12 {strides = array<i32>} : memref<64x1152xf32, #tpu.memory_space<vmem>>, vector<4x1152xf32>,
    %c0_14 = arith.constant 0 : index
    %c0_15 = arith.constant 0 : index
    %c35 = arith.constant 35 : index
    %14 = vector.load %arg1[%c0_14, %c0_15, %c35] : memref<1x4x1280xf32, #tpu.memory_space<vmem>>, vector<1x4x1152xf32>
    %15 = vector.shape_cast %14 : vector<1x4x1152xf32> to vector<4x1152xf32>
    %c16 = arith.constant 16 : index
    %c0_16 = arith.constant 0 : index
    %16 = vector.load %arg5[%c16, %c0_16] : memref<64x1152xf32, #tpu.memory_space<vmem>>, vector<4x1152xf32>
    tpu.vector_store %arg5[%c16, %c0_16], %15 {strides = array<i32>} : memref<64x1152xf32, #tpu.memory_space<vmem>>, vector<4x1152xf32>,
    %c0_17 = arith.constant 0 : index
    %c0_18 = arith.constant 0 : index
    %c36 = arith.constant 36 : index
    %17 = vector.load %arg1[%c0_17, %c0_18, %c36] : memref<1x4x1280xf32, #tpu.memory_space<vmem>>, vector<1x4x1152xf32>
    %18 = vector.shape_cast %17 : vector<1x4x1152xf32> to vector<4x1152xf32>
    %c20 = arith.constant 20 : index
    %c0_19 = arith.constant 0 : index
    %19 = vector.load %arg5[%c20, %c0_19] : memref<64x1152xf32, #tpu.memory_space<vmem>>, vector<4x1152xf32>
    tpu.vector_store %arg5[%c20, %c0_19], %18 {strides = array<i32>} : memref<64x1152xf32, #tpu.memory_space<vmem>>, vector<4x1152xf32>,
    %c0_20 = arith.constant 0 : index
    %c0_21 = arith.constant 0 : index
    %c37 = arith.constant 37 : index
    %20 = vector.load %arg1[%c0_20, %c0_21, %c37] : memref<1x4x1280xf32, #tpu.memory_space<vmem>>, vector<1x4x1152xf32>
    %21 = vector.shape_cast %20 : vector<1x4x1152xf32> to vector<4x1152xf32>
    %c24 = arith.constant 24 : index
    %c0_22 = arith.constant 0 : index
    %22 = vector.load %arg5[%c24, %c0_22] : memref<64x1152xf32, #tpu.memory_space<vmem>>, vector<4x1152xf32>
    tpu.vector_store %arg5[%c24, %c0_22], %21 {strides = array<i32>} : memref<64x1152xf32, #tpu.memory_space<vmem>>, vector<4x1152xf32>,
    %c0_23 = arith.constant 0 : index
    %c0_24 = arith.constant 0 : index
    %c38 = arith.constant 38 : index
    %23 = vector.load %arg1[%c0_23, %c0_24, %c38] : memref<1x4x1280xf32, #tpu.memory_space<vmem>>, vector<1x4x1152xf32>
    %24 = vector.shape_cast %23 : vector<1x4x1152xf32> to vector<4x1152xf32>
    %c28 = arith.constant 28 : index
    %c0_25 = arith.constant 0 : index
    %25 = vector.load %arg5[%c28, %c0_25] : memref<64x1152xf32, #tpu.memory_space<vmem>>, vector<4x1152xf32>
    tpu.vector_store %arg5[%c28, %c0_25], %24 {strides = array<i32>} : memref<64x1152xf32, #tpu.memory_space<vmem>>, vector<4x1152xf32>,
    %c0_26 = arith.constant 0 : index
    %c0_27 = arith.constant 0 : index
    %c70 = arith.constant 70 : index
    %26 = vector.load %arg1[%c0_26, %c0_27, %c70] : memref<1x4x1280xf32, #tpu.memory_space<vmem>>, vector<1x4x1152xf32>
    %27 = vector.shape_cast %26 : vector<1x4x1152xf32> to vector<4x1152xf32>
    %c32 = arith.constant 32 : index
    %c0_28 = arith.constant 0 : index
    %28 = vector.load %arg5[%c32, %c0_28] : memref<64x1152xf32, #tpu.memory_space<vmem>>, vector<4x1152xf32>
    tpu.vector_store %arg5[%c32, %c0_28], %27 {strides = array<i32>} : memref<64x1152xf32, #tpu.memory_space<vmem>>, vector<4x1152xf32>,
    %c0_29 = arith.constant 0 : index
    %c0_30 = arith.constant 0 : index
    %c71 = arith.constant 71 : index
    %29 = vector.load %arg1[%c0_29, %c0_30, %c71] : memref<1x4x1280xf32, #tpu.memory_space<vmem>>, vector<1x4x1152xf32>
    %30 = vector.shape_cast %29 : vector<1x4x1152xf32> to vector<4x1152xf32>
    %c36_31 = arith.constant 36 : index
    %c0_32 = arith.constant 0 : index
    %31 = vector.load %arg5[%c36_31, %c0_32] : memref<64x1152xf32, #tpu.memory_space<vmem>>, vector<4x1152xf32>
    tpu.vector_store %arg5[%c36_31, %c0_32], %30 {strides = array<i32>} : memref<64x1152xf32, #tpu.memory_space<vmem>>, vector<4x1152xf32>,
    %c0_33 = arith.constant 0 : index
    %c0_34 = arith.constant 0 : index
    %c72 = arith.constant 72 : index
    %32 = vector.load %arg1[%c0_33, %c0_34, %c72] : memref<1x4x1280xf32, #tpu.memory_space<vmem>>, vector<1x4x1152xf32>
    %33 = vector.shape_cast %32 : vector<1x4x1152xf32> to vector<4x1152xf32>
    %c40 = arith.constant 40 : index
    %c0_35 = arith.constant 0 : index
    %34 = vector.load %arg5[%c40, %c0_35] : memref<64x1152xf32, #tpu.memory_space<vmem>>, vector<4x1152xf32>
    tpu.vector_store %arg5[%c40, %c0_35], %33 {strides = array<i32>} : memref<64x1152xf32, #tpu.memory_space<vmem>>, vector<4x1152xf32>,
    %c0_36 = arith.constant 0 : index
    %c0_37 = arith.constant 0 : index
    %c73 = arith.constant 73 : index
    %35 = vector.load %arg1[%c0_36, %c0_37, %c73] : memref<1x4x1280xf32, #tpu.memory_space<vmem>>, vector<1x4x1152xf32>
    %36 = vector.shape_cast %35 : vector<1x4x1152xf32> to vector<4x1152xf32>
    %c44 = arith.constant 44 : index
    %c0_38 = arith.constant 0 : index
    %37 = vector.load %arg5[%c44, %c0_38] : memref<64x1152xf32, #tpu.memory_space<vmem>>, vector<4x1152xf32>
    tpu.vector_store %arg5[%c44, %c0_38], %36 {strides = array<i32>} : memref<64x1152xf32, #tpu.memory_space<vmem>>, vector<4x1152xf32>,
    %c0_39 = arith.constant 0 : index
    %c0_40 = arith.constant 0 : index
    %c105 = arith.constant 105 : index
    %38 = vector.load %arg1[%c0_39, %c0_40, %c105] : memref<1x4x1280xf32, #tpu.memory_space<vmem>>, vector<1x4x1152xf32>
    %39 = vector.shape_cast %38 : vector<1x4x1152xf32> to vector<4x1152xf32>
    %c48 = arith.constant 48 : index
    %c0_41 = arith.constant 0 : index
    %40 = vector.load %arg5[%c48, %c0_41] : memref<64x1152xf32, #tpu.memory_space<vmem>>, vector<4x1152xf32>
    tpu.vector_store %arg5[%c48, %c0_41], %39 {strides = array<i32>} : memref<64x1152xf32, #tpu.memory_space<vmem>>, vector<4x1152xf32>,
    %c0_42 = arith.constant 0 : index
    %c0_43 = arith.constant 0 : index
    %c106 = arith.constant 106 : index
    %41 = vector.load %arg1[%c0_42, %c0_43, %c106] : memref<1x4x1280xf32, #tpu.memory_space<vmem>>, vector<1x4x1152xf32>
    %42 = vector.shape_cast %41 : vector<1x4x1152xf32> to vector<4x1152xf32>
    %c52 = arith.constant 52 : index
    %c0_44 = arith.constant 0 : index
    %43 = vector.load %arg5[%c52, %c0_44] : memref<64x1152xf32, #tpu.memory_space<vmem>>, vector<4x1152xf32>
    tpu.vector_store %arg5[%c52, %c0_44], %42 {strides = array<i32>} : memref<64x1152xf32, #tpu.memory_space<vmem>>, vector<4x1152xf32>,
    %c0_45 = arith.constant 0 : index
    %c0_46 = arith.constant 0 : index
    %c107 = arith.constant 107 : index
    %44 = vector.load %arg1[%c0_45, %c0_46, %c107] : memref<1x4x1280xf32, #tpu.memory_space<vmem>>, vector<1x4x1152xf32>
    %45 = vector.shape_cast %44 : vector<1x4x1152xf32> to vector<4x1152xf32>
    %c56 = arith.constant 56 : index
    %c0_47 = arith.constant 0 : index
    %46 = vector.load %arg5[%c56, %c0_47] : memref<64x1152xf32, #tpu.memory_space<vmem>>, vector<4x1152xf32>
    tpu.vector_store %arg5[%c56, %c0_47], %45 {strides = array<i32>} : memref<64x1152xf32, #tpu.memory_space<vmem>>, vector<4x1152xf32>,
    %c0_48 = arith.constant 0 : index
    %c0_49 = arith.constant 0 : index
    %c108 = arith.constant 108 : index
    %47 = vector.load %arg1[%c0_48, %c0_49, %c108] : memref<1x4x1280xf32, #tpu.memory_space<vmem>>, vector<1x4x1152xf32>
    %48 = vector.shape_cast %47 : vector<1x4x1152xf32> to vector<4x1152xf32>
    %c60 = arith.constant 60 : index
    %c0_50 = arith.constant 0 : index
    %49 = vector.load %arg5[%c60, %c0_50] : memref<64x1152xf32, #tpu.memory_space<vmem>>, vector<4x1152xf32>
    tpu.vector_store %arg5[%c60, %c0_50], %48 {strides = array<i32>} : memref<64x1152xf32, #tpu.memory_space<vmem>>, vector<4x1152xf32>,
    %c0_51 = arith.constant 0 : index
    %c0_52 = arith.constant 0 : index
    %50 = vector.load %arg2[%c0_51, %c0_52] : memref<8x64xf32, #tpu.memory_space<vmem>>, vector<8x64xf32>
    %c0_53 = arith.constant 0 : index
    %c0_54 = arith.constant 0 : index
    %51 = vector.load %arg5[%c0_53, %c0_54] : memref<64x1152xf32, #tpu.memory_space<vmem>>, vector<64x1152xf32>
    %cst_55 = arith.constant dense<0.000000e+00> : vector<8x1152xf32>
    %52 = tpu.matmul %50, %51, %cst_55 {dimension_numbers = #tpu.dot_dimension_numbers<[1], [0], [0], [1], [0, 0, 1, 1], [], []>} : vector<8x64xf32>, vector<64x1152xf32>, vector<8x1152xf32> -> vector<8x1152xf32>
    %c0_56 = arith.constant 0 : index
    %c0_57 = arith.constant 0 : index
    %53 = vector.load %arg3[%c0_56, %c0_57] : memref<1x1152xf32, #tpu.memory_space<vmem>>, vector<1x1152xf32>
    %54 = vector.broadcast %53 : vector<1x1152xf32> to vector<8x1152xf32>
    %55 = arith.mulf %52, %54 : vector<8x1152xf32>
    %cst_58 = arith.constant dense<0.000000e+00> : vector<8xf32>
    %56 = vector.multi_reduction <add>, %55, %cst_58 [1] : vector<8x1152xf32> to vector<8xf32>
    %57 = vector.shape_cast %56 : vector<8xf32> to vector<8x1xf32>
    %58 = arith.addf %0, %57 : vector<8x1xf32>
    %59 = arith.mulf %55, %55 : vector<8x1152xf32>
    %cst_59 = arith.constant dense<0.000000e+00> : vector<8xf32>
    %60 = vector.multi_reduction <add>, %59, %cst_59 [1] : vector<8x1152xf32> to vector<8xf32>
    %61 = vector.shape_cast %60 : vector<8xf32> to vector<8x1xf32>
    %62 = arith.addf %1, %61 : vector<8x1xf32>
    %c0_60 = arith.constant 0 : index
    %c0_61 = arith.constant 0 : index
    %c0_62 = arith.constant 0 : index
    %63 = vector.load %arg4[%c0_60, %c0_61, %c0_62] : memref<1x8x1152xf32, #tpu.memory_space<vmem>>, vector<1x8x1152xf32>
    %64 = vector.shape_cast %63 : vector<1x8x1152xf32> to vector<8x1152xf32>
    %65 = vector.shape_cast %52 : vector<8x1152xf32> to vector<1x8x1152xf32>
    tpu.vector_store %arg4[%c0_60, %c0_61, %c0_62], %65 {strides = array<i32>} : memref<1x8x1152xf32, #tpu.memory_space<vmem>>, vector<1x8x1152xf32>,
    %cst_63 = arith.constant 9.765625E-4 : f32
    %66 = vector.broadcast %cst_63 : f32 to vector<8x1xf32>
    %67 = arith.mulf %58, %66 : vector<8x1xf32>
    %cst_64 = arith.constant 9.765625E-4 : f32
    %68 = vector.broadcast %cst_64 : f32 to vector<8x1xf32>
    %69 = arith.mulf %62, %68 : vector<8x1xf32>
    %70 = arith.mulf %67, %67 : vector<8x1xf32>
    %71 = arith.subf %69, %70 : vector<8x1xf32>
    %cst_65 = arith.constant 9.99999974E-6 : f32
    %72 = vector.broadcast %cst_65 : f32 to vector<8x1xf32>
    %73 = arith.addf %71, %72 : vector<8x1xf32>
    %74 = math.rsqrt %73 : vector<8x1xf32>
    %c0_66 = arith.constant 0 : index
    %c0_67 = arith.constant 0 : index
    %c0_68 = arith.constant 0 : index
    %75 = vector.load %arg4[%c0_66, %c0_67, %c0_68] : memref<1x8x1152xf32, #tpu.memory_space<vmem>>, vector<1x8x1152xf32>
    %76 = vector.shape_cast %75 : vector<1x8x1152xf32> to vector<8x1152xf32>
    %77 = vector.broadcast %67 : vector<8x1xf32> to vector<8x1152xf32>
    %78 = arith.subf %76, %77 : vector<8x1152xf32>
    %79 = vector.broadcast %74 : vector<8x1xf32> to vector<8x1152xf32>
    %80 = arith.mulf %78, %79 : vector<8x1152xf32>
    %cst_69 = arith.constant 2.000000e-01 : f32
    %81 = vector.broadcast %cst_69 : f32 to vector<8x1152xf32>
    %82 = arith.mulf %81, %80 : vector<8x1152xf32>
    %83 = arith.maximumf %80, %82 : vector<8x1152xf32>
    %c0_70 = arith.constant 0 : index
    %c0_71 = arith.constant 0 : index
    %c0_72 = arith.constant 0 : index
    %84 = vector.load %arg4[%c0_70, %c0_71, %c0_72] : memref<1x8x1152xf32, #tpu.memory_space<vmem>>, vector<1x8x1152xf32>
    %85 = vector.shape_cast %84 : vector<1x8x1152xf32> to vector<8x1152xf32>
    %86 = vector.shape_cast %83 : vector<8x1152xf32> to vector<1x8x1152xf32>
    tpu.vector_store %arg4[%c0_70, %c0_71, %c0_72], %86 {strides = array<i32>} : memref<1x8x1152xf32, #tpu.memory_space<vmem>>, vector<1x8x1152xf32>,
    return
  }
  func.func @transform_0(%arg0: i32) -> (i32, i32, i32) {
    %c0_i32 = arith.constant 0 : i32
    %c0_i32_0 = arith.constant 0 : i32
    %c0_i32_1 = arith.constant 0 : i32
    return %arg0, %c0_i32, %c0_i32_0 : i32, i32, i32
  }
  func.func @transform_1(%arg0: i32) -> (i32, i32) {
    %c0_i32 = arith.constant 0 : i32
    %c0_i32_0 = arith.constant 0 : i32
    %c0_i32_1 = arith.constant 0 : i32
    return %c0_i32, %c0_i32_0 : i32, i32
  }
  func.func @transform_2(%arg0: i32) -> (i32, i32) {
    %c0_i32 = arith.constant 0 : i32
    %c0_i32_0 = arith.constant 0 : i32
    %c0_i32_1 = arith.constant 0 : i32
    return %c0_i32, %c0_i32_0 : i32, i32
  }
  func.func @transform_3(%arg0: i32) -> (i32, i32, i32) {
    %c0_i32 = arith.constant 0 : i32
    %c0_i32_0 = arith.constant 0 : i32
    %c0_i32_1 = arith.constant 0 : i32
    return %arg0, %c0_i32, %c0_i32_0 : i32, i32, i32
  }
}

</mosaic_0001>

<bundles_post_ra>
// kernel: deconvblock_forward.1
= control target key start
LH: loop header
LB: loop body
LE: loop exit
PB: predicated region body
PF: predicated region fallthrough
CT: control target
= control target key end

     0   :  { %s1992_s12 = smov 0   ;;  %s2701_s0 = inlined_call_operand.vmem [shape: f32[2,4,1280], index: 0, kind: input, shape index: {}]   ;;  %s2702_s1 = inlined_call_operand.vmem [shape: f32[8,64], index: 1, kind: input, shape index: {}]   ;;  %s2703_s2 = inlined_call_operand.vmem [shape: f32[1,1152], index: 2, kind: input, shape index: {}]   ;;  %s2704_s3 = inlined_call_operand.vmem [shape: f32[2,8,1152], index: 3, kind: output, shape index: {}]  }
   0x1 LB: > { %s1786_s13 = sadd.s32 4294967295, %s1952_s12   ;;  %p1790_p0 = scmp.ge.s32.totalorder %s1952_s12, 1  ;;  %s1952_s12 = sphi %s1992_s12, %s13_s12  }
   0x2   : > { %p137_p1 = scmp.lt.s32.totalorder %s1952_s12, 3 }
   0x4   : > { %p138_p2 = pnand %p1790_p0, %p137_p1 }
   0x5   : > { %p161_p3 = scmp.lt.s32.totalorder (!%p138_p2), %s1786_s13, 1  ;;  %s1954_s18 = smov (!%p138_p2), 126   ;;  %v1969_v11 = vmov (!%p138_p2), 0.0   ;;  %vm295_vm0 = vcmask (!%p138_p2), 1031168   ;;  %vm358_vm1 = vcmask (!%p138_p2), 1022976   ;;  %vm232_vm2 = vcmask (!%p138_p2), 1039360  }
   0x6   : > { %141 = sbr.rel (%p138_p2) target bundleno = 831 (0x33f), region = 32  ;;  %s1955_s19 = smov (!%p138_p2), 127   ;;  %1283 = vmatprep.mubr.f32.mxu0 (!%p138_p2), %v1969_v11  ;;  %1354 = vmatprep.mubr.f32.mxu1 (!%p138_p2), %v1969_v11  ;;  %vm421_vm3 = vcmask (!%p138_p2), 760832   ;;  %vm484_vm4 = vcmask (!%p138_p2), 752640   ;;  %vm547_vm5 = vcmask (!%p138_p2), 744448   ;;  %vm610_vm6 = vcmask (!%p138_p2), 736256  }
   0x7   : > { %s1956_s20 = smov (!%p138_p2), 125   ;;  %s1957_s21 = smov (!%p138_p2), 93   ;;  %vm673_vm7 = vcmask (!%p138_p2), 474112   ;;  %vm736_vm8 = vcmask (!%p138_p2), 465920   ;;  %vm799_vm9 = vcmask (!%p138_p2), 457728   ;;  %vm862_vm10 = vcmask (!%p138_p2), 449536  }
   0x8   : > { %s1958_s22 = smov (!%p138_p2), 92   ;;  %s1959_s23 = smov (!%p138_p2), 91   ;;  %vm925_vm11 = vcmask (!%p138_p2), 187392   ;;  %vm988_vm12 = vcmask (!%p138_p2), 179200   ;;  %vm1051_vm13 = vcmask (!%p138_p2), 171008   ;;  %vm2705_vm14 = vcmask (!%p138_p2), 162816  }
   0x9   : > { %s1960_s24 = smov (!%p138_p2), 90   ;;  %s1961_s25 = smov (!%p138_p2), 58   ;;  %vm1215_vm15 = vcmask (!%p138_p2), 523264  }
   0xa   : > { %s1962_s26 = smov (!%p138_p2), 57   ;;  %s1963_s27 = smov (!%p138_p2), 56  }
   0xb   : > { %s1964_s28 = smov (!%p138_p2), 55   ;;  %s1965_s29 = smov (!%p138_p2), 23  }
   0xc   : > { %s1966_s30 = smov (!%p138_p2), 22   ;;  %s1967_s4 = smov (!%p138_p2), 21  }
   0xd   : > { %s2710_s13 = smov (!%p161_p3, %s1786_s13), 1  ;;  %s1968_s5 = smov 20  }
   0xe   : > { %s1905_s14 = smul.u32 40, %s2710_s13 }
  0x10   : > { %s2006_s17 = scalar_lea.vmem %s2701_s0, %s1905_s14  ;;  %s1906_s14 = smul.u32 72, %s2710_s13 }
  0x11   : > { %v2009_v0 = vld [vmem:[%s2006_s17 + $0x8] sm:$0xff]  ;;  %v2012_v1 = vld [vmem:[%s2006_s17] sm:$0xff]  ;;  %v2015_v2 = vld [vmem:[%s2006_s17 + $0x10] sm:$0xff] }
  0x12   : > { %279 = vrot.lane.b32.xlu1 %v2009_v0, %s1954_s18  ;;  %v2021_v3 = vcombine.high %v2009_v0, %v2009_v0  ;;  %214 = vrot.lane.b32.xlu0 %v2012_v1, %s1955_s19  ;;  %v270_v4 = vcombine.high %v2012_v1, %v2012_v1  ;;  %188 = vst [vmem:[#allocation2] sm:$0xf] %v2012_v1  ;;  %190 = vst [vmem:[#allocation2 + $0x10] sm:$0xf] %v2009_v0  ;;  %v2119_v9 = vld [vmem:[%s2006_s17 + $0x18] sm:$0xff]  ;;  %s170_s13 = scalar_lea.vmem %s2704_s3, %s1906_s14 }
  0x13   : > { %192 = vst [vmem:[#allocation2 + $0x20] sm:$0xf] %v2015_v2  ;;  %v2032_v5 = vcombine.high %v2015_v2, %v2015_v2  ;;  %v334_v6 = vcombine.low %v2009_v0, %v2009_v0  ;;  %v207_v7 = vcombine.low %v2012_v1, %v2012_v1  ;;  %v2089_v8 = vcombine.low %v2015_v2, %v2015_v2 }
  0x14   : > { %189 = vst [vmem:[#allocation2 + $0x8] sm:$0xf] %v270_v4  ;;  %191 = vst [vmem:[#allocation2 + $0x18] sm:$0xf] %v2021_v3  ;;  %v2126_v10 = vcombine.low %v2119_v9, %v2119_v9 }
  0x15   : > { %193 = vst [vmem:[#allocation2 + $0x28] sm:$0xf] %v2032_v5 }
  0x16   : > { %277 = vrot.lane.b32.xlu1 %v270_v4, %s1954_s18  ;;  %340 = vrot.lane.b32.xlu0 %v2012_v1, %s1956_s20 }
  0x1a   : > { %342 = vrot.lane.b32.xlu1 %v334_v6, %s1956_s20  ;;  %216 = vrot.lane.b32.xlu0 %v334_v6, %s1955_s19 }
  0x1e   : > { %275 = vrot.lane.b32.xlu1 %v2012_v1, %s1954_s18  ;;  %212 = vrot.lane.b32.xlu0 %v207_v7, %s1955_s19 }
  0x22   : > { %403 = vrot.lane.b32.xlu1 %v270_v4, %s1957_s21  ;;  %338 = vrot.lane.b32.xlu0 %v207_v7, %s1956_s20 }
  0x26   : > { %466 = vrot.lane.b32.xlu1 %v2012_v1, %s1958_s22  ;;  %405 = vrot.lane.b32.xlu0 %v2009_v0, %s1957_s21 }
  0x2a   : > { %529 = vrot.lane.b32.xlu1 %v270_v4, %s1959_s23  ;;  %468 = vrot.lane.b32.xlu0 %v334_v6, %s1958_s22 }
  0x2e   : > { %592 = vrot.lane.b32.xlu1 %v2012_v1, %s1960_s24  ;;  %531 = vrot.lane.b32.xlu0 %v2009_v0, %s1959_s23 }
  0x32   : > { %401 = vrot.lane.b32.xlu1 %v2012_v1, %s1957_s21  ;;  %594 = vrot.lane.b32.xlu0 %v334_v6, %s1960_s24 }
  0x36   : > { %527 = vrot.lane.b32.xlu1 %v2012_v1, %s1959_s23  ;;  %464 = vrot.lane.b32.xlu0 %v207_v7, %s1958_s22 }
  0x3a   : > { %655 = vrot.lane.b32.xlu1 %v270_v4, %s1961_s25  ;;  %590 = vrot.lane.b32.xlu0 %v207_v7, %s1960_s24 }
  0x3e   : > { %718 = vrot.lane.b32.xlu1 %v2012_v1, %s1962_s26  ;;  %657 = vrot.lane.b32.xlu0 %v2009_v0, %s1961_s25 }
  0x42   : > { %781 = vrot.lane.b32.xlu1 %v270_v4, %s1963_s27  ;;  %720 = vrot.lane.b32.xlu0 %v334_v6, %s1962_s26 }
  0x46   : > { %844 = vrot.lane.b32.xlu1 %v2012_v1, %s1964_s28  ;;  %783 = vrot.lane.b32.xlu0 %v2009_v0, %s1963_s27 }
  0x4a   : > { %653 = vrot.lane.b32.xlu1 %v2012_v1, %s1961_s25  ;;  %846 = vrot.lane.b32.xlu0 %v334_v6, %s1964_s28 }
  0x4e   : > { %779 = vrot.lane.b32.xlu1 %v2012_v1, %s1963_s27  ;;  %716 = vrot.lane.b32.xlu0 %v207_v7, %s1962_s26 }
  0x52   : > { %218 = vrot.lane.b32.xlu1 %v2009_v0, %s1955_s19  ;;  %842 = vrot.lane.b32.xlu0 %v207_v7, %s1964_s28 }
  0x56   : > { %281 = vrot.lane.b32.xlu1 %v2021_v3, %s1954_s18  ;;  %220 = vrot.lane.b32.xlu0 %v2089_v8, %s1955_s19 }
  0x5a   : > { %344 = vrot.lane.b32.xlu1 %v2009_v0, %s1956_s20  ;;  %283 = vrot.lane.b32.xlu0 %v2015_v2, %s1954_s18 }
  0x5e   : > { %907 = vrot.lane.b32.xlu1 %v270_v4, %s1965_s29  ;;  %346 = vrot.lane.b32.xlu0 %v2089_v8, %s1956_s20 }
  0x62   : > { %970 = vrot.lane.b32.xlu1 %v2012_v1, %s1966_s30  ;;  %909 = vrot.lane.b32.xlu0 %v2009_v0, %s1965_s29 }
  0x66   : > { %1033 = vrot.lane.b32.xlu1 %v270_v4, %s1967_s4  ;;  %972 = vrot.lane.b32.xlu0 %v334_v6, %s1966_s30 }
  0x6a   : > { %1096 = vrot.lane.b32.xlu1 %v2012_v1, %s1968_s5  ;;  %1035 = vrot.lane.b32.xlu0 %v2009_v0, %s1967_s4 }
  0x6e   : > { %905 = vrot.lane.b32.xlu1 %v2012_v1, %s1965_s29  ;;  %1098 = vrot.lane.b32.xlu0 %v334_v6, %s1968_s5 }
  0x72   : > { %1031 = vrot.lane.b32.xlu1 %v2012_v1, %s1967_s4  ;;  %968 = vrot.lane.b32.xlu0 %v207_v7, %s1966_s30 }
  0x76   : > { %222 = vrot.lane.b32.xlu1 %v2015_v2, %s1955_s19  ;;  %1094 = vrot.lane.b32.xlu0 %v207_v7, %s1968_s5 }
  0x7a   : > { %285 = vrot.lane.b32.xlu1 %v2032_v5, %s1954_s18  ;;  %224 = vrot.lane.b32.xlu0 %v2126_v10, %s1955_s19 }
  0x7e   : > { %348 = vrot.lane.b32.xlu1 %v2015_v2, %s1956_s20  ;;  %287 = vrot.lane.b32.xlu0 %v2119_v9, %s1954_s18 }
  0x82   : > { %407 = vrot.lane.b32.xlu1 %v2021_v3, %s1957_s21  ;;  %350 = vrot.lane.b32.xlu0 %v2126_v10, %s1956_s20 }
  0x84   : > { %v2142_v12 = vpop.permute.xlu1 %279  ;;  %v215_v13 = vpop.permute.xlu0 %214 }
  0x86   : > { %470 = vrot.lane.b32.xlu1 %v2009_v0, %s1958_s22  ;;  %409 = vrot.lane.b32.xlu0 %v2015_v2, %s1957_s21 }
  0x88   : > { %v278_v14 = vpop.permute.xlu1 %277  ;;  %v341_v15 = vpop.permute.xlu0 %340 }
  0x89   : > { %v297_v16 = vsel %vm295_vm0, %v278_v14, %v2142_v12 }
  0x8a   : > { %315 = vst [vmem:[#allocation2 + $0x50] sm:$0xf] %v297_v16  ;;  %533 = vrot.lane.b32.xlu1 %v2021_v3, %s1959_s23  ;;  %472 = vrot.lane.b32.xlu0 %v2089_v8, %s1958_s22 }
  0x8c   : > { %v2154_v17 = vpop.permute.xlu1 %342  ;;  %v2156_v18 = vpop.permute.xlu0 %216 }
  0x8d   : > { %v360_v19 = vsel %vm358_vm1, %v341_v15, %v2154_v17  ;;  %v234_v20 = vsel %vm232_vm2, %v215_v13, %v2156_v18 }
  0x8e   : > { %378 = vst [vmem:[#allocation2 + $0x50] sm:$0xf0] %v360_v19  ;;  %252 = vst [vmem:[#allocation2 + $0x8] sm:$0xf0] %v234_v20  ;;  %596 = vrot.lane.b32.xlu1 %v2009_v0, %s1960_s24  ;;  %535 = vrot.lane.b32.xlu0 %v2015_v2, %s1959_s23 }
  0x90   : > { %v276_v21 = vpop.permute.xlu1 %275  ;;  %v213_v22 = vpop.permute.xlu0 %212 }
  0x91   : > { %v296_v23 = vsel %vm295_vm0, %v276_v21, %v278_v14  ;;  %v233_v24 = vsel %vm232_vm2, %v213_v22, %v215_v13 }
  0x92   : > { %314 = vst [vmem:[#allocation2 + $0x48] sm:$0xf] %v296_v23  ;;  %251 = vst [vmem:[#allocation2] sm:$0xf0] %v233_v24  ;;  %411 = vrot.lane.b32.xlu1 %v2032_v5, %s1957_s21  ;;  %598 = vrot.lane.b32.xlu0 %v2089_v8, %s1960_s24 }
  0x94   : > { %v404_v25 = vpop.permute.xlu1 %403  ;;  %v339_v26 = vpop.permute.xlu0 %338 }
  0x95   : > { %v359_v27 = vsel %vm358_vm1, %v339_v26, %v341_v15  ;;  %v1144_v28 = vld [vmem:[#allocation2 + $0x8] sm:$0xff]  ;;  %v1153_v29 = vld [vmem:[#allocation2 + $0x50] sm:$0xff] }
  0x96   : > { %377 = vst [vmem:[#allocation2 + $0x48] sm:$0xf0] %v359_v27  ;;  %474 = vrot.lane.b32.xlu1 %v2015_v2, %s1958_s22  ;;  %413 = vrot.lane.b32.xlu0 %v2119_v9, %s1957_s21  ;;  %v1829_v30 = vpack.c.bf16 %v1153_v29, %v1144_v28 }
  0x98   : > { %v467_v31 = vpop.permute.xlu1 %466  ;;  %v2177_v32 = vpop.permute.xlu0 %405  ;;  %1830 = vmatprep.subr.bf16.mxu0 %v1829_v30  ;;  %v174_v30 = vld [vmem:[%s2006_s17 + $0x18] sm:$0xff] }
  0x99   : > { %v423_v33 = vsel %vm421_vm3, %v404_v25, %v2177_v32  ;;  %v1143_v37 = vld [vmem:[#allocation2] sm:$0xff]  ;;  %194 = vst [vmem:[#allocation2 + $0x30] sm:$0xf] %v174_v30 }
  0x9a   : > { %441 = vst [vmem:[#allocation2 + $0x98] sm:$0xf] %v423_v33  ;;  %537 = vrot.lane.b32.xlu1 %v2032_v5, %s1959_s23  ;;  %476 = vrot.lane.b32.xlu0 %v2126_v10, %s1958_s22 }
  0x9c   : > { %v530_v34 = vpop.permute.xlu1 %529  ;;  %v2185_v35 = vpop.permute.xlu0 %468 }
  0x9d   : > { %v486_v36 = vsel %vm484_vm4, %v467_v31, %v2185_v35  ;;  %v1152_v38 = vld [vmem:[#allocation2 + $0x48] sm:$0xff] }
  0x9e   : > { %504 = vst [vmem:[#allocation2 + $0x98] sm:$0xf0] %v486_v36  ;;  %600 = vrot.lane.b32.xlu1 %v2015_v2, %s1960_s24  ;;  %539 = vrot.lane.b32.xlu0 %v2119_v9, %s1959_s23  ;;  %v1831_v39 = vpack.c.bf16 %v1152_v38, %v1143_v37 }
  0xa0   : > { %v593_v40 = vpop.permute.xlu1 %592  ;;  %v2193_v41 = vpop.permute.xlu0 %531  ;;  %1832 = vmatpush1.bf16.msra.mxu0 %v1831_v39 }
  0xa1   : > { %v549_v42 = vsel %vm547_vm5, %v530_v34, %v2193_v41 }
  0xa2   : > { %567 = vst [vmem:[#allocation2 + $0xe0] sm:$0xf] %v549_v42  ;;  %659 = vrot.lane.b32.xlu1 %v2021_v3, %s1961_s25  ;;  %602 = vrot.lane.b32.xlu0 %v2126_v10, %s1960_s24 }
  0xa4   : > { %v402_v43 = vpop.permute.xlu1 %401  ;;  %v2201_v44 = vpop.permute.xlu0 %594 }
  0xa5   : > { %v422_v45 = vsel %vm421_vm3, %v402_v43, %v404_v25  ;;  %v612_v46 = vsel %vm610_vm6, %v593_v40, %v2201_v44  ;;  %v1162_v54 = vld [vmem:[#allocation2 + $0x98] sm:$0xff] }
  0xa6   : > { %440 = vst [vmem:[#allocation2 + $0x90] sm:$0xf] %v422_v45  ;;  %630 = vst [vmem:[#allocation2 + $0xe0] sm:$0xf0] %v612_v46  ;;  %722 = vrot.lane.b32.xlu1 %v2009_v0, %s1962_s26  ;;  %661 = vrot.lane.b32.xlu0 %v2015_v2, %s1961_s25  ;;  %v2289_v45 = vld [vmem:[%s2006_s17 + $0x20] sm:$0xff] }
  0xa8   : > { %v528_v47 = vpop.permute.xlu1 %527  ;;  %v465_v48 = vpop.permute.xlu0 %464 }
  0xa9   : > { %v548_v49 = vsel %vm547_vm5, %v528_v47, %v530_v34  ;;  %v485_v50 = vsel %vm484_vm4, %v465_v48, %v467_v31  ;;  %v2297_v48 = vcombine.high %v2119_v9, %v2119_v9 }
  0xaa   : > { %566 = vst [vmem:[#allocation2 + $0xd8] sm:$0xf] %v548_v49  ;;  %503 = vst [vmem:[#allocation2 + $0x90] sm:$0xf0] %v485_v50  ;;  %785 = vrot.lane.b32.xlu1 %v2021_v3, %s1963_s27  ;;  %724 = vrot.lane.b32.xlu0 %v2089_v8, %s1962_s26 }
  0xac   : > { %v656_v51 = vpop.permute.xlu1 %655  ;;  %v591_v52 = vpop.permute.xlu0 %590 }
  0xad   : > { %v611_v53 = vsel %vm610_vm6, %v591_v52, %v593_v40  ;;  %v1171_v55 = vld [vmem:[#allocation2 + $0xe0] sm:$0xff] }
  0xae   : > { %629 = vst [vmem:[#allocation2 + $0xd8] sm:$0xf0] %v611_v53  ;;  %848 = vrot.lane.b32.xlu1 %v2009_v0, %s1964_s28  ;;  %787 = vrot.lane.b32.xlu0 %v2015_v2, %s1963_s27  ;;  %v1833_v56 = vpack.c.bf16 %v1171_v55, %v1162_v54 }
  0xb0   : > { %v719_v57 = vpop.permute.xlu1 %718  ;;  %v2221_v58 = vpop.permute.xlu0 %657  ;;  %1834 = vmatprep.subr.bf16.mxu0 %v1833_v56 }
  0xb1   : > { %v675_v59 = vsel %vm673_vm7, %v656_v51, %v2221_v58  ;;  %v1161_v63 = vld [vmem:[#allocation2 + $0x90] sm:$0xff] }
  0xb2   : > { %693 = vst [vmem:[#allocation2 + $0x128] sm:$0xf] %v675_v59  ;;  %663 = vrot.lane.b32.xlu1 %v2032_v5, %s1961_s25  ;;  %850 = vrot.lane.b32.xlu0 %v2089_v8, %s1964_s28 }
  0xb4   : > { %v782_v60 = vpop.permute.xlu1 %781  ;;  %v2229_v61 = vpop.permute.xlu0 %720 }
  0xb5   : > { %v738_v62 = vsel %vm736_vm8, %v719_v57, %v2229_v61  ;;  %v1170_v1 = vld [vmem:[#allocation2 + $0xd8] sm:$0xff] }
  0xb6   : > { %756 = vst [vmem:[#allocation2 + $0x128] sm:$0xf0] %v738_v62  ;;  %726 = vrot.lane.b32.xlu1 %v2015_v2, %s1962_s26  ;;  %665 = vrot.lane.b32.xlu0 %v2119_v9, %s1961_s25  ;;  %v1835_v4 = vpack.c.bf16 %v1170_v1, %v1161_v63 }
  0xb8   : > { %v845_v6 = vpop.permute.xlu1 %844  ;;  %v2237_v7 = vpop.permute.xlu0 %783  ;;  %1836 = vmatpush1.bf16.msra.mxu0 %v1835_v4 }
  0xb9   : > { %v801_v13 = vsel %vm799_vm9, %v782_v60, %v2237_v7 }
  0xba   : > { %819 = vst [vmem:[#allocation2 + $0x170] sm:$0xf] %v801_v13  ;;  %789 = vrot.lane.b32.xlu1 %v2032_v5, %s1963_s27  ;;  %728 = vrot.lane.b32.xlu0 %v2126_v10, %s1962_s26 }
  0xbc   : > { %v654_v14 = vpop.permute.xlu1 %653  ;;  %v2245_v15 = vpop.permute.xlu0 %846 }
  0xbd   : > { %v674_v16 = vsel %vm673_vm7, %v654_v14, %v656_v51  ;;  %v864_v19 = vsel %vm862_vm10, %v845_v6, %v2245_v15  ;;  %v1180_v28 = vld [vmem:[#allocation2 + $0x128] sm:$0xff] }
  0xbe   : > { %692 = vst [vmem:[#allocation2 + $0x120] sm:$0xf] %v674_v16  ;;  %882 = vst [vmem:[#allocation2 + $0x170] sm:$0xf0] %v864_v19  ;;  %852 = vrot.lane.b32.xlu1 %v2015_v2, %s1964_s28  ;;  %791 = vrot.lane.b32.xlu0 %v2119_v9, %s1963_s27 }
  0xc0   : > { %v780_v20 = vpop.permute.xlu1 %779  ;;  %v717_v21 = vpop.permute.xlu0 %716 }
  0xc1   : > { %v800_v22 = vsel %vm799_vm9, %v780_v20, %v782_v60  ;;  %v737_v23 = vsel %vm736_vm8, %v717_v21, %v719_v57 }
  0xc2   : > { %818 = vst [vmem:[#allocation2 + $0x168] sm:$0xf] %v800_v22  ;;  %755 = vst [vmem:[#allocation2 + $0x120] sm:$0xf0] %v737_v23  ;;  %911 = vrot.lane.b32.xlu1 %v2021_v3, %s1965_s29  ;;  %854 = vrot.lane.b32.xlu0 %v2126_v10, %s1964_s28 }
  0xc4   : > { %v219_v24 = vpop.permute.xlu1 %218  ;;  %v843_v25 = vpop.permute.xlu0 %842 }
  0xc5   : > { %v235_v26 = vsel %vm232_vm2, %v2156_v18, %v219_v24  ;;  %v863_v27 = vsel %vm862_vm10, %v843_v25, %v845_v6  ;;  %v1189_v29 = vld [vmem:[#allocation2 + $0x170] sm:$0xff]  ;;  %v183_v18 = vcombine.high %v174_v30, %v174_v30 }
  0xc6   : > { %253 = vst [vmem:[#allocation2 + $0x10] sm:$0xf0] %v235_v26  ;;  %881 = vst [vmem:[#allocation2 + $0x168] sm:$0xf0] %v863_v27  ;;  %974 = vrot.lane.b32.xlu1 %v2009_v0, %s1966_s30  ;;  %913 = vrot.lane.b32.xlu0 %v2015_v2, %s1965_s29  ;;  %v1837_v31 = vpack.c.bf16 %v1189_v29, %v1180_v28 }
  0xc7   : > { %195 = vst [vmem:[#allocation2 + $0x38] sm:$0xf] %v183_v18 }
  0xc8   : > { %v282_v33 = vpop.permute.xlu1 %281  ;;  %v2268_v34 = vpop.permute.xlu0 %220  ;;  %1838 = vmatprep.subr.bf16.mxu0 %v1837_v31 }
  0xc9   : > { %v298_v36 = vsel %vm295_vm0, %v2142_v12, %v282_v33  ;;  %v236_v37 = vsel %vm232_vm2, %v219_v24, %v2268_v34  ;;  %v1179_v42 = vld [vmem:[#allocation2 + $0x120] sm:$0xff] }
  0xca   : > { %316 = vst [vmem:[#allocation2 + $0x58] sm:$0xf] %v298_v36  ;;  %254 = vst [vmem:[#allocation2 + $0x18] sm:$0xf0] %v236_v37  ;;  %1037 = vrot.lane.b32.xlu1 %v2021_v3, %s1967_s4  ;;  %976 = vrot.lane.b32.xlu0 %v2089_v8, %s1966_s30 }
  0xcc   : > { %v345_v38 = vpop.permute.xlu1 %344  ;;  %v2278_v39 = vpop.permute.xlu0 %283 }
  0xcd   : > { %v361_v40 = vsel %vm358_vm1, %v2154_v17, %v345_v38  ;;  %v299_v12 = vsel %vm295_vm0, %v282_v33, %v2278_v39  ;;  %v1188_v43 = vld [vmem:[#allocation2 + $0x168] sm:$0xff]  ;;  %v1145_v59 = vld [vmem:[#allocation2 + $0x10] sm:$0xff] }
  0xce   : > { %379 = vst [vmem:[#allocation2 + $0x58] sm:$0xf0] %v361_v40  ;;  %317 = vst [vmem:[#allocation2 + $0x60] sm:$0xf] %v299_v12  ;;  %1100 = vrot.lane.b32.xlu1 %v2009_v0, %s1968_s5  ;;  %1039 = vrot.lane.b32.xlu0 %v2015_v2, %s1967_s4  ;;  %v1839_v3 = vpack.c.bf16 %v1188_v43, %v1179_v42  ;;  %v2305_v0 = vcombine.low %v2289_v45, %v2289_v45  ;;  %v2379_v12 = vld [vmem:[%s2702_s1] sm:$0xff] }
  0xd0   : > { %v908_v46 = vpop.permute.xlu1 %907  ;;  %v2291_v47 = vpop.permute.xlu0 %346  ;;  %1840 = vmatpush1.bf16.msra.mxu0 %v1839_v3 }
  0xd1   : > { %v362_v17 = vsel %vm358_vm1, %v345_v38, %v2291_v47  ;;  %v1146_v55 = vld [vmem:[#allocation2 + $0x18] sm:$0xff]  ;;  %v175_v38 = vld [vmem:[%s2006_s17 + $0x20] sm:$0xf] }
  0xd2   : > { %380 = vst [vmem:[#allocation2 + $0x60] sm:$0xf0] %v362_v17  ;;  %226 = vrot.lane.b32.xlu1 %v2119_v9, %s1955_s19  ;;  %1102 = vrot.lane.b32.xlu0 %v2089_v8, %s1968_s5  ;;  %196 = vst [vmem:[#allocation2 + $0x40] sm:$0xf] %v175_v38 }
  0xd4   : > { %v971_v49 = vpop.permute.xlu1 %970  ;;  %v2307_v50 = vpop.permute.xlu0 %909 }
  0xd5   : > { %v927_v51 = vsel %vm925_vm11, %v908_v46, %v2307_v50  ;;  %v1154_v53 = vld [vmem:[#allocation2 + $0x58] sm:$0xff] }
  0xd6   : > { %945 = vst [vmem:[#allocation2 + $0x1b8] sm:$0xf] %v927_v51  ;;  %289 = vrot.lane.b32.xlu1 %v2297_v48, %s1954_s18  ;;  %228 = vrot.lane.b32.xlu0 %v2305_v0, %s1955_s19  ;;  %v1847_v60 = vpack.c.bf16 %v1154_v53, %v1145_v59 }
  0xd8   : > { %v1034_v8 = vpop.permute.xlu1 %1033  ;;  %v2315_v52 = vpop.permute.xlu0 %972 }
  0xd9   : > { %v990_v54 = vsel %vm988_vm12, %v971_v49, %v2315_v52  ;;  %v1155_v56 = vld [vmem:[#allocation2 + $0x60] sm:$0xff] }
  0xda   : > { %1008 = vst [vmem:[#allocation2 + $0x1b8] sm:$0xf0] %v990_v54  ;;  %352 = vrot.lane.b32.xlu1 %v2119_v9, %s1956_s20  ;;  %291 = vrot.lane.b32.xlu0 %v2289_v45, %s1954_s18  ;;  %v1845_v57 = vpack.c.bf16 %v1155_v56, %v1146_v55  ;;  %v2404_v55 = vcombine.high %v2289_v45, %v2289_v45 }
  0xdc   : > { %v1097_v62 = vpop.permute.xlu1 %1096  ;;  %v2323_v63 = vpop.permute.xlu0 %1035  ;;  %1846 = vmatprep.subr.bf16.mxu1 %v1845_v57 }
  0xdd   : > { %v1053_v1 = vsel %vm1051_vm13, %v1034_v8, %v2323_v63  ;;  %1848 = vmatpush1.bf16.msra.mxu1 %v1847_v60 }
  0xde   : > { %1071 = vst [vmem:[#allocation2 + $0x200] sm:$0xf] %v1053_v1  ;;  %915 = vrot.lane.b32.xlu1 %v2032_v5, %s1965_s29  ;;  %354 = vrot.lane.b32.xlu0 %v2305_v0, %s1956_s20 }
  0xe0   : > { %v906_v4 = vpop.permute.xlu1 %905  ;;  %v2331_v6 = vpop.permute.xlu0 %1098 }
  0xe1   : > { %v926_v13 = vsel %vm925_vm11, %v906_v4, %v908_v46  ;;  %v1116_v14 = vsel %vm2705_vm14, %v1097_v62, %v2331_v6  ;;  %v1198_v26 = vld [vmem:[#allocation2 + $0x1b8] sm:$0xff] }
  0xe2   : > { %944 = vst [vmem:[#allocation2 + $0x1b0] sm:$0xf] %v926_v13  ;;  %1134 = vst [vmem:[#allocation2 + $0x200] sm:$0xf0] %v1116_v14  ;;  %978 = vrot.lane.b32.xlu1 %v2015_v2, %s1966_s30  ;;  %917 = vrot.lane.b32.xlu0 %v2119_v9, %s1965_s29 }
  0xe4   : > { %v1032_v16 = vpop.permute.xlu1 %1031  ;;  %v969_v19 = vpop.permute.xlu0 %968 }
  0xe5   : > { %v1052_v20 = vsel %vm1051_vm13, %v1032_v16, %v1034_v8  ;;  %v989_v21 = vsel %vm988_vm12, %v969_v19, %v971_v49 }
  0xe6   : > { %1070 = vst [vmem:[#allocation2 + $0x1f8] sm:$0xf] %v1052_v20  ;;  %1007 = vst [vmem:[#allocation2 + $0x1b0] sm:$0xf0] %v989_v21  ;;  %1041 = vrot.lane.b32.xlu1 %v2032_v5, %s1967_s4  ;;  %980 = vrot.lane.b32.xlu0 %v2126_v10, %s1966_s30 }
  0xe8   : > { %v223_v22 = vpop.permute.xlu1 %222  ;;  %v1095_v23 = vpop.permute.xlu0 %1094 }
  0xe9   : > { %v237_v24 = vsel %vm232_vm2, %v2268_v34, %v223_v22  ;;  %v1115_v25 = vsel %vm2705_vm14, %v1095_v23, %v1097_v62  ;;  %v1207_v27 = vld [vmem:[#allocation2 + $0x200] sm:$0xff] }
  0xea   : > { %255 = vst [vmem:[#allocation2 + $0x20] sm:$0xf0] %v237_v24  ;;  %1133 = vst [vmem:[#allocation2 + $0x1f8] sm:$0xf0] %v1115_v25  ;;  %1104 = vrot.lane.b32.xlu1 %v2015_v2, %s1968_s5  ;;  %1043 = vrot.lane.b32.xlu0 %v2119_v9, %s1967_s4  ;;  %v1841_v5 = vpack.c.bf16 %v1207_v27, %v1198_v26 }
  0xec   : > { %v286_v28 = vpop.permute.xlu1 %285  ;;  %v2353_v29 = vpop.permute.xlu0 %224  ;;  %1842 = vmatprep.subr.bf16.mxu0 %v1841_v5 }
  0xed   : > { %v300_v30 = vsel %vm295_vm0, %v2278_v39, %v286_v28  ;;  %v238_v31 = vsel %vm232_vm2, %v223_v22, %v2353_v29  ;;  %v1197_v36 = vld [vmem:[#allocation2 + $0x1b0] sm:$0xff] }
  0xee   : > { %318 = vst [vmem:[#allocation2 + $0x68] sm:$0xf] %v300_v30  ;;  %256 = vst [vmem:[#allocation2 + $0x28] sm:$0xf0] %v238_v31  ;;  %415 = vrot.lane.b32.xlu1 %v2297_v48, %s1957_s21  ;;  %1106 = vrot.lane.b32.xlu0 %v2126_v10, %s1968_s5 }
  0xf0   : > { %v349_v2 = vpop.permute.xlu1 %348  ;;  %v2363_v33 = vpop.permute.xlu0 %287 }
  0xf1   : > { %v363_v34 = vsel %vm358_vm1, %v2291_v47, %v349_v2  ;;  %v301_v18 = vsel %vm295_vm0, %v286_v28, %v2363_v33  ;;  %v1206_v37 = vld [vmem:[#allocation2 + $0x1f8] sm:$0xff]  ;;  %v1147_v57 = vld [vmem:[#allocation2 + $0x20] sm:$0xff] }
  0xf2   : > { %381 = vst [vmem:[#allocation2 + $0x68] sm:$0xf0] %v363_v34  ;;  %319 = vst [vmem:[#allocation2 + $0x70] sm:$0xf] %v301_v18  ;;  %478 = vrot.lane.b32.xlu1 %v2119_v9, %s1958_s22  ;;  %417 = vrot.lane.b32.xlu0 %v2289_v45, %s1957_s21  ;;  %v1843_v10 = vpack.c.bf16 %v1206_v37, %v1197_v36 }
  0xf4   : > { %v408_v39 = vpop.permute.xlu1 %407  ;;  %v2374_v40 = vpop.permute.xlu0 %350  ;;  %1844 = vmatpush1.bf16.msra.mxu0 %v1843_v10 }
  0xf5   : > { %v424_v42 = vsel %vm421_vm3, %v2177_v32, %v408_v39  ;;  %v364_v43 = vsel %vm358_vm1, %v349_v2, %v2374_v40  ;;  %v1148_v54 = vld [vmem:[#allocation2 + $0x28] sm:$0xff] }
  0xf6   : > { %442 = vst [vmem:[#allocation2 + $0xa0] sm:$0xf] %v424_v42  ;;  %382 = vst [vmem:[#allocation2 + $0x70] sm:$0xf0] %v364_v43  ;;  %541 = vrot.lane.b32.xlu1 %v2297_v48, %s1959_s23  ;;  %480 = vrot.lane.b32.xlu0 %v2305_v0, %s1958_s22 }
  0xf7   : > { %1793 = vmatmul.mubr.msk.f32.vlgmr.msra.gmra.mrb[0].mxu0 %vm1215_vm15, %v2379_v12 }
  0xf8   : > { %v471_v3 = vpop.permute.xlu1 %470  ;;  %v410_v46 = vpop.permute.xlu0 %409  ;;  %1425 = vmatprep.mubr.f32.mxu0 %v1969_v11 }
  0xf9   : > { %v487_v32 = vsel %vm484_vm4, %v2185_v35, %v471_v3  ;;  %v425_v47 = vsel %vm421_vm3, %v408_v39, %v410_v46  ;;  %v1156_v51 = vld [vmem:[#allocation2 + $0x68] sm:$0xff] }
  0xfa   : > { %505 = vst [vmem:[#allocation2 + $0xa0] sm:$0xf0] %v487_v32  ;;  %443 = vst [vmem:[#allocation2 + $0xa8] sm:$0xf] %v425_v47  ;;  %604 = vrot.lane.b32.xlu1 %v2119_v9, %s1960_s24  ;;  %543 = vrot.lane.b32.xlu0 %v2289_v45, %s1959_s23  ;;  %v1863_v59 = vpack.c.bf16 %v1156_v51, %v1147_v57 }
  0xfc   : > { %v534_v17 = vpop.permute.xlu1 %533  ;;  %v473_v49 = vpop.permute.xlu0 %472 }
  0xfd   : > { %v550_v8 = vsel %vm547_vm5, %v2193_v41, %v534_v17  ;;  %v488_v53 = vsel %vm484_vm4, %v471_v3, %v473_v49  ;;  %v1157_v35 = vld [vmem:[#allocation2 + $0x70] sm:$0xff] }
  0xfe   : > { %568 = vst [vmem:[#allocation2 + $0xe8] sm:$0xf] %v550_v8  ;;  %506 = vst [vmem:[#allocation2 + $0xa8] sm:$0xf0] %v488_v53  ;;  %230 = vrot.lane.b32.xlu1 %v2289_v45, %s1955_s19  ;;  %606 = vrot.lane.b32.xlu0 %v2305_v0, %s1960_s24  ;;  %v1861_v56 = vpack.c.bf16 %v1157_v35, %v1148_v54 }
 0x100   : > { %v597_v41 = vpop.permute.xlu1 %596  ;;  %v536_v60 = vpop.permute.xlu0 %535  ;;  %1862 = vmatprep.subr.bf16.mxu0 %v1861_v56 }
 0x101   : > { %v613_v62 = vsel %vm610_vm6, %v2201_v44, %v597_v41  ;;  %v551_v1 = vsel %vm547_vm5, %v534_v17, %v536_v60  ;;  %1864 = vmatpush1.bf16.msra.mxu0 %v1863_v59  ;;  %v1163_v30 = vld [vmem:[#allocation2 + $0xa0] sm:$0xff] }
 0x102   : > { %631 = vst [vmem:[#allocation2 + $0xe8] sm:$0xf0] %v613_v62  ;;  %569 = vst [vmem:[#allocation2 + $0xf0] sm:$0xf] %v551_v1  ;;  %356 = vrot.lane.b32.xlu1 %v2289_v45, %s1956_s20  ;;  %293 = vrot.lane.b32.xlu0 %v2404_v55, %s1954_s18 }
 0x104   : > { %v412_v4 = vpop.permute.xlu1 %411  ;;  %v599_v13 = vpop.permute.xlu0 %598 }
 0x105   : > { %v426_v14 = vsel %vm421_vm3, %v410_v46, %v412_v4  ;;  %v614_v16 = vsel %vm610_vm6, %v597_v41, %v599_v13  ;;  %v1164_v27 = vld [vmem:[#allocation2 + $0xa8] sm:$0xff] }
 0x106   : > { %444 = vst [vmem:[#allocation2 + $0xb0] sm:$0xf] %v426_v14  ;;  %632 = vst [vmem:[#allocation2 + $0xf0] sm:$0xf0] %v614_v16  ;;  %669 = vrot.lane.b32.xlu1 %v2289_v45, %s1961_s25  ;;  %667 = vrot.lane.b32.xlu0 %v2297_v48, %s1961_s25 }
 0x108   : > { %v475_v44 = vpop.permute.xlu1 %474  ;;  %v2423_v19 = vpop.permute.xlu0 %413 }
 0x109   : > { %v489_v20 = vsel %vm484_vm4, %v473_v49, %v475_v44  ;;  %v427_v21 = vsel %vm421_vm3, %v412_v4, %v2423_v19  ;;  %v1172_v24 = vld [vmem:[#allocation2 + $0xe8] sm:$0xff] }
 0x10a   : > { %507 = vst [vmem:[#allocation2 + $0xb0] sm:$0xf0] %v489_v20  ;;  %445 = vst [vmem:[#allocation2 + $0xb8] sm:$0xf] %v427_v21  ;;  %732 = vrot.lane.b32.xlu1 %v2305_v0, %s1962_s26  ;;  %730 = vrot.lane.b32.xlu0 %v2119_v9, %s1962_s26  ;;  %v1851_v31 = vpack.c.bf16 %v1172_v24, %v1163_v30 }
 0x10c   : > { %v538_v22 = vpop.permute.xlu1 %537  ;;  %v2432_v23 = vpop.permute.xlu0 %476 }
 0x10d   : > { %v552_v25 = vsel %vm547_vm5, %v536_v60, %v538_v22  ;;  %v490_v26 = vsel %vm484_vm4, %v475_v44, %v2432_v23  ;;  %v1173_v5 = vld [vmem:[#allocation2 + $0xf0] sm:$0xff] }
 0x10e   : > { %570 = vst [vmem:[#allocation2 + $0xf8] sm:$0xf] %v552_v25  ;;  %508 = vst [vmem:[#allocation2 + $0xb8] sm:$0xf0] %v490_v26  ;;  %795 = vrot.lane.b32.xlu1 %v2289_v45, %s1963_s27  ;;  %793 = vrot.lane.b32.xlu0 %v2297_v48, %s1963_s27  ;;  %v1849_v28 = vpack.c.bf16 %v1173_v5, %v1164_v27 }
 0x110   : > { %v601_v2 = vpop.permute.xlu1 %600  ;;  %v2441_v34 = vpop.permute.xlu0 %539  ;;  %1850 = vmatprep.subr.bf16.mxu1 %v1849_v28 }
 0x111   : > { %v615_v18 = vsel %vm610_vm6, %v599_v13, %v601_v2  ;;  %v553_v36 = vsel %vm547_vm5, %v538_v22, %v2441_v34  ;;  %1852 = vmatpush1.bf16.msra.mxu1 %v1851_v31  ;;  %v1165_v53 = vld [vmem:[#allocation2 + $0xb0] sm:$0xff] }
 0x112   : > { %633 = vst [vmem:[#allocation2 + $0xf8] sm:$0xf0] %v615_v18  ;;  %571 = vst [vmem:[#allocation2 + $0x100] sm:$0xf] %v553_v36  ;;  %858 = vrot.lane.b32.xlu1 %v2305_v0, %s1964_s28  ;;  %856 = vrot.lane.b32.xlu0 %v2119_v9, %s1964_s28 }
 0x114   : > { %v660_v37 = vpop.permute.xlu1 %659  ;;  %v2450_v38 = vpop.permute.xlu0 %602 }
 0x115   : > { %v676_v10 = vsel %vm673_vm7, %v2221_v58, %v660_v37  ;;  %v616_v39 = vsel %vm610_vm6, %v601_v2, %v2450_v38  ;;  %v1166_v51 = vld [vmem:[#allocation2 + $0xb8] sm:$0xff] }
 0x116   : > { %694 = vst [vmem:[#allocation2 + $0x130] sm:$0xf] %v676_v10  ;;  %634 = vst [vmem:[#allocation2 + $0x100] sm:$0xf0] %v616_v39  ;;  %482 = vrot.lane.b32.xlu1 %v2289_v45, %s1958_s22  ;;  %419 = vrot.lane.b32.xlu0 %v2404_v55, %s1957_s21 }
 0x118   : > { %v723_v42 = vpop.permute.xlu1 %722  ;;  %v662_v43 = vpop.permute.xlu0 %661 }
 0x119   : > { %v739_v3 = vsel %vm736_vm8, %v2229_v61, %v723_v42  ;;  %v677_v46 = vsel %vm673_vm7, %v660_v37, %v662_v43  ;;  %v1174_v47 = vld [vmem:[#allocation2 + $0xf8] sm:$0xff] }
 0x11a   : > { %757 = vst [vmem:[#allocation2 + $0x130] sm:$0xf0] %v739_v3  ;;  %695 = vst [vmem:[#allocation2 + $0x138] sm:$0xf] %v677_v46  ;;  %608 = vrot.lane.b32.xlu1 %v2289_v45, %s1960_s24  ;;  %545 = vrot.lane.b32.xlu0 %v2404_v55, %s1959_s23  ;;  %v1867_v54 = vpack.c.bf16 %v1174_v47, %v1165_v53 }
 0x11c   : > { %v786_v58 = vpop.permute.xlu1 %785  ;;  %v725_v32 = vpop.permute.xlu0 %724 }
 0x11d   : > { %v802_v17 = vsel %vm799_vm9, %v2237_v7, %v786_v58  ;;  %v740_v49 = vsel %vm736_vm8, %v723_v42, %v725_v32  ;;  %v1175_v61 = vld [vmem:[#allocation2 + $0x100] sm:$0xff] }
 0x11e   : > { %820 = vst [vmem:[#allocation2 + $0x178] sm:$0xf] %v802_v17  ;;  %758 = vst [vmem:[#allocation2 + $0x138] sm:$0xf0] %v740_v49  ;;  %921 = vrot.lane.b32.xlu1 %v2289_v45, %s1965_s29  ;;  %919 = vrot.lane.b32.xlu0 %v2297_v48, %s1965_s29  ;;  %v1865_v8 = vpack.c.bf16 %v1175_v61, %v1166_v51 }
 0x120   : > { %v849_v35 = vpop.permute.xlu1 %848  ;;  %v788_v56 = vpop.permute.xlu0 %787  ;;  %1866 = vmatprep.subr.bf16.mxu0 %v1865_v8 }
 0x121   : > { %v865_v7 = vsel %vm862_vm10, %v2245_v15, %v849_v35  ;;  %v803_v57 = vsel %vm799_vm9, %v786_v58, %v788_v56  ;;  %1868 = vmatpush1.bf16.msra.mxu0 %v1867_v54 }
 0x122   : > { %883 = vst [vmem:[#allocation2 + $0x178] sm:$0xf0] %v865_v7  ;;  %821 = vst [vmem:[#allocation2 + $0x180] sm:$0xf] %v803_v57  ;;  %984 = vrot.lane.b32.xlu1 %v2305_v0, %s1966_s30  ;;  %982 = vrot.lane.b32.xlu0 %v2119_v9, %s1966_s30 }
 0x124   : > { %v664_v59 = vpop.permute.xlu1 %663  ;;  %v851_v41 = vpop.permute.xlu0 %850 }
 0x125   : > { %v678_v60 = vsel %vm673_vm7, %v662_v43, %v664_v59  ;;  %v866_v62 = vsel %vm862_vm10, %v849_v35, %v851_v41  ;;  %v1182_v21 = vld [vmem:[#allocation2 + $0x138] sm:$0xff] }
 0x126   : > { %696 = vst [vmem:[#allocation2 + $0x140] sm:$0xf] %v678_v60  ;;  %884 = vst [vmem:[#allocation2 + $0x180] sm:$0xf0] %v866_v62  ;;  %1047 = vrot.lane.b32.xlu1 %v2289_v45, %s1967_s4  ;;  %1045 = vrot.lane.b32.xlu0 %v2297_v48, %s1967_s4 }
 0x128   : > { %v727_v15 = vpop.permute.xlu1 %726  ;;  %v2487_v1 = vpop.permute.xlu0 %665 }
 0x129   : > { %v741_v4 = vsel %vm736_vm8, %v725_v32, %v727_v15  ;;  %v679_v13 = vsel %vm673_vm7, %v664_v59, %v2487_v1  ;;  %v1190_v48 = vld [vmem:[#allocation2 + $0x178] sm:$0xff] }
 0x12a   : > { %759 = vst [vmem:[#allocation2 + $0x140] sm:$0xf0] %v741_v4  ;;  %697 = vst [vmem:[#allocation2 + $0x148] sm:$0xf] %v679_v13  ;;  %1110 = vrot.lane.b32.xlu1 %v2305_v0, %s1968_s5  ;;  %1108 = vrot.lane.b32.xlu0 %v2119_v9, %s1968_s5  ;;  %v1181_v0 = vld [vmem:[#allocation2 + $0x130] sm:$0xff] }
 0x12b   : > { %v1855_v24 = vpack.c.bf16 %v1190_v48, %v1181_v0 }
 0x12c   : > { %v790_v14 = vpop.permute.xlu1 %789  ;;  %v2496_v16 = vpop.permute.xlu0 %728 }
 0x12d   : > { %v804_v44 = vsel %vm799_vm9, %v788_v56, %v790_v14  ;;  %v742_v20 = vsel %vm736_vm8, %v727_v15, %v2496_v16  ;;  %v1191_v22 = vld [vmem:[#allocation2 + $0x180] sm:$0xff] }
 0x12e   : > { %822 = vst [vmem:[#allocation2 + $0x188] sm:$0xf] %v804_v44  ;;  %760 = vst [vmem:[#allocation2 + $0x148] sm:$0xf0] %v742_v20  ;;  %734 = vrot.lane.b32.xlu1 %v2289_v45, %s1962_s26  ;;  %671 = vrot.lane.b32.xlu0 %v2404_v55, %s1961_s25  ;;  %v1853_v9 = vpack.c.bf16 %v1191_v22, %v1182_v21 }
 0x130   : > { %v853_v25 = vpop.permute.xlu1 %852  ;;  %v2505_v26 = vpop.permute.xlu0 %791  ;;  %1854 = vmatprep.subr.bf16.mxu1 %v1853_v9 }
 0x131   : > { %v867_v27 = vsel %vm862_vm10, %v851_v41, %v853_v25  ;;  %v805_v5 = vsel %vm799_vm9, %v790_v14, %v2505_v26  ;;  %1856 = vmatpush1.bf16.msra.mxu1 %v1855_v24  ;;  %v1183_v32 = vld [vmem:[#allocation2 + $0x140] sm:$0xff] }
 0x132   : > { %885 = vst [vmem:[#allocation2 + $0x188] sm:$0xf0] %v867_v27  ;;  %823 = vst [vmem:[#allocation2 + $0x190] sm:$0xf] %v805_v5  ;;  %860 = vrot.lane.b32.xlu1 %v2289_v45, %s1964_s28  ;;  %797 = vrot.lane.b32.xlu0 %v2404_v55, %s1963_s27 }
 0x134   : > { %v912_v28 = vpop.permute.xlu1 %911  ;;  %v2514_v30 = vpop.permute.xlu0 %854 }
 0x135   : > { %v928_v31 = vsel %vm925_vm11, %v2307_v50, %v912_v28  ;;  %v868_v2 = vsel %vm862_vm10, %v853_v25, %v2514_v30  ;;  %v1184_v46 = vld [vmem:[#allocation2 + $0x148] sm:$0xff] }
 0x136   : > { %946 = vst [vmem:[#allocation2 + $0x1c0] sm:$0xf] %v928_v31  ;;  %886 = vst [vmem:[#allocation2 + $0x190] sm:$0xf0] %v868_v2  ;;  %986 = vrot.lane.b32.xlu1 %v2289_v45, %s1966_s30  ;;  %923 = vrot.lane.b32.xlu0 %v2404_v55, %s1965_s29 }
 0x138   : > { %v975_v18 = vpop.permute.xlu1 %974  ;;  %v914_v36 = vpop.permute.xlu0 %913 }
 0x139   : > { %v991_v37 = vsel %vm988_vm12, %v2315_v52, %v975_v18  ;;  %v929_v10 = vsel %vm925_vm11, %v912_v28, %v914_v36  ;;  %v1192_v42 = vld [vmem:[#allocation2 + $0x188] sm:$0xff] }
 0x13a   : > { %1009 = vst [vmem:[#allocation2 + $0x1c0] sm:$0xf0] %v991_v37  ;;  %947 = vst [vmem:[#allocation2 + $0x1c8] sm:$0xf] %v929_v10  ;;  %1112 = vrot.lane.b32.xlu1 %v2289_v45, %s1968_s5  ;;  %1049 = vrot.lane.b32.xlu0 %v2404_v55, %s1967_s4  ;;  %v1871_v47 = vpack.c.bf16 %v1192_v42, %v1183_v32 }
 0x13c   : > { %v1038_v50 = vpop.permute.xlu1 %1037  ;;  %v977_v39 = vpop.permute.xlu0 %976 }
 0x13d   : > { %v1054_v43 = vsel %vm1051_vm13, %v2323_v63, %v1038_v50  ;;  %v992_v3 = vsel %vm988_vm12, %v975_v18, %v977_v39  ;;  %v1193_v52 = vld [vmem:[#allocation2 + $0x190] sm:$0xff] }
 0x13e   : > { %1072 = vst [vmem:[#allocation2 + $0x208] sm:$0xf] %v1054_v43  ;;  %1010 = vst [vmem:[#allocation2 + $0x1c8] sm:$0xf0] %v992_v3  ;;  %v1869_v58 = vpack.c.bf16 %v1193_v52, %v1184_v46 }
 0x140   : > { %v1101_v17 = vpop.permute.xlu1 %1100  ;;  %v1040_v45 = vpop.permute.xlu0 %1039  ;;  %1870 = vmatprep.subr.bf16.mxu0 %v1869_v58 }
 0x141   : > { %v1117_v55 = vsel %vm2705_vm14, %v2331_v6, %v1101_v17  ;;  %v1055_v49 = vsel %vm1051_vm13, %v1038_v50, %v1040_v45  ;;  %1872 = vmatpush1.bf16.msra.mxu0 %v1871_v47  ;;  %v1199_v62 = vld [vmem:[#allocation2 + $0x1c0] sm:$0xff] }
 0x142   : > { %1135 = vst [vmem:[#allocation2 + $0x208] sm:$0xf0] %v1117_v55  ;;  %1073 = vst [vmem:[#allocation2 + $0x210] sm:$0xf] %v1055_v49 }
 0x144   : > { %v227_v63 = vpop.permute.xlu1 %226  ;;  %v1103_v51 = vpop.permute.xlu0 %1102 }
 0x145   : > { %v239_v61 = vsel %vm232_vm2, %v2353_v29, %v227_v63  ;;  %v1118_v8 = vsel %vm2705_vm14, %v1101_v17, %v1103_v51  ;;  %v1200_v41 = vld [vmem:[#allocation2 + $0x1c8] sm:$0xff] }
 0x146   : > { %257 = vst [vmem:[#allocation2 + $0x30] sm:$0xf0] %v239_v61  ;;  %1136 = vst [vmem:[#allocation2 + $0x210] sm:$0xf0] %v1118_v8 }
 0x148   : > { %v290_v53 = vpop.permute.xlu1 %289  ;;  %v2540_v54 = vpop.permute.xlu0 %228 }
 0x149   : > { %v302_v6 = vsel %vm295_vm0, %v2363_v33, %v290_v53  ;;  %v240_v35 = vsel %vm232_vm2, %v227_v63, %v2540_v54  ;;  %v1208_v57 = vld [vmem:[#allocation2 + $0x208] sm:$0xff] }
 0x14a   : > { %320 = vst [vmem:[#allocation2 + $0x78] sm:$0xf] %v302_v6  ;;  %258 = vst [vmem:[#allocation2 + $0x38] sm:$0xf0] %v240_v35  ;;  %v1859_v15 = vpack.c.bf16 %v1208_v57, %v1199_v62  ;;  %v1970_v6 = vmov 0.0|0.0  }
 0x14c   : > { %v353_v56 = vpop.permute.xlu1 %352  ;;  %v2546_v7 = vpop.permute.xlu0 %291 }
 0x14d   : > { %v365_v29 = vsel %vm358_vm1, %v2374_v40, %v353_v56  ;;  %v303_v59 = vsel %vm295_vm0, %v290_v53, %v2546_v7  ;;  %v1209_v60 = vld [vmem:[#allocation2 + $0x210] sm:$0xff] }
 0x14e   : > { %383 = vst [vmem:[#allocation2 + $0x78] sm:$0xf0] %v365_v29  ;;  %321 = vst [vmem:[#allocation2 + $0x80] sm:$0xf] %v303_v59  ;;  %v1857_v33 = vpack.c.bf16 %v1209_v60, %v1200_v41  ;;  %v1149_v31 = vld [vmem:[#allocation2 + $0x30] sm:$0xff] }
 0x150   : > { %v916_v4 = vpop.permute.xlu1 %915  ;;  %v2552_v13 = vpop.permute.xlu0 %354  ;;  %1858 = vmatprep.subr.bf16.mxu1 %v1857_v33 }
 0x151   : > { %v930_v14 = vsel %vm925_vm11, %v914_v36, %v916_v4  ;;  %v366_v48 = vsel %vm358_vm1, %v353_v56, %v2552_v13  ;;  %1860 = vmatpush1.bf16.msra.mxu1 %v1859_v15  ;;  %v1150_v27 = vld [vmem:[#allocation2 + $0x38] sm:$0xff] }
 0x152   : > { %948 = vst [vmem:[#allocation2 + $0x1d0] sm:$0xf] %v930_v14  ;;  %384 = vst [vmem:[#allocation2 + $0x80] sm:$0xf0] %v366_v48 }
 0x154   : > { %v979_v40 = vpop.permute.xlu1 %978  ;;  %v2557_v44 = vpop.permute.xlu0 %917  ;;  %1794 = vmatmul.mubr.msk.f32.vlgmr.msra.gmra.mrb[0].mxu1 %vm1215_vm15, %v2379_v12 }
 0x155   : > { %v993_v20 = vsel %vm988_vm12, %v977_v39, %v979_v40  ;;  %v931_v21 = vsel %vm925_vm11, %v916_v4, %v2557_v44  ;;  %1496 = vmatprep.mubr.f32.mxu1 %v1969_v11  ;;  %v1158_v0 = vld [vmem:[#allocation2 + $0x78] sm:$0xff] }
 0x156   : > { %1011 = vst [vmem:[#allocation2 + $0x1d0] sm:$0xf0] %v993_v20  ;;  %949 = vst [vmem:[#allocation2 + $0x1d8] sm:$0xf] %v931_v21  ;;  %v1879_v2 = vpack.c.bf16 %v1158_v0, %v1149_v31 }
 0x158   : > { %v1042_v22 = vpop.permute.xlu1 %1041  ;;  %v2565_v9 = vpop.permute.xlu0 %980 }
 0x159   : > { %v1056_v24 = vsel %vm1051_vm13, %v1040_v45, %v1042_v22  ;;  %v994_v25 = vsel %vm988_vm12, %v979_v40, %v2565_v9  ;;  %v1159_v5 = vld [vmem:[#allocation2 + $0x80] sm:$0xff] }
 0x15a   : > { %1074 = vst [vmem:[#allocation2 + $0x218] sm:$0xf] %v1056_v24  ;;  %1012 = vst [vmem:[#allocation2 + $0x1d8] sm:$0xf0] %v994_v25  ;;  %v1877_v28 = vpack.c.bf16 %v1159_v5, %v1150_v27 }
 0x15c   : > { %v1105_v18 = vpop.permute.xlu1 %1104  ;;  %v2570_v36 = vpop.permute.xlu0 %1043  ;;  %1878 = vmatprep.subr.bf16.mxu1 %v1877_v28 }
 0x15d   : > { %v1119_v37 = vsel %vm2705_vm14, %v1103_v51, %v1105_v18  ;;  %v1057_v10 = vsel %vm1051_vm13, %v1042_v22, %v2570_v36  ;;  %1880 = vmatpush1.bf16.msra.mxu1 %v1879_v2  ;;  %v1201_v63 = vld [vmem:[#allocation2 + $0x1d0] sm:$0xff] }
 0x15e   : > { %1137 = vst [vmem:[#allocation2 + $0x218] sm:$0xf0] %v1119_v37  ;;  %1075 = vst [vmem:[#allocation2 + $0x220] sm:$0xf] %v1057_v10 }
 0x160   : > { %v416_v50 = vpop.permute.xlu1 %415  ;;  %v2575_v39 = vpop.permute.xlu0 %1106 }
 0x161   : > { %v428_v42 = vsel %vm421_vm3, %v2423_v19, %v416_v50  ;;  %v1120_v43 = vsel %vm2705_vm14, %v1105_v18, %v2575_v39  ;;  %v1202_v55 = vld [vmem:[#allocation2 + $0x1d8] sm:$0xff]  ;;  %vm1971_vm14 = vmmov 0  }
 0x162   : > { %446 = vst [vmem:[#allocation2 + $0xc0] sm:$0xf] %v428_v42  ;;  %1138 = vst [vmem:[#allocation2 + $0x220] sm:$0xf0] %v1120_v43 }
 0x164   : > { %v479_v3 = vpop.permute.xlu1 %478  ;;  %v2581_v46 = vpop.permute.xlu0 %417 }
 0x165   : > { %v491_v52 = vsel %vm484_vm4, %v2432_v23, %v479_v3  ;;  %v429_v58 = vsel %vm421_vm3, %v416_v50, %v2581_v46  ;;  %v1210_v19 = vld [vmem:[#allocation2 + $0x218] sm:$0xff] }
 0x166   : > { %509 = vst [vmem:[#allocation2 + $0xc0] sm:$0xf0] %v491_v52  ;;  %447 = vst [vmem:[#allocation2 + $0xc8] sm:$0xf] %v429_v58  ;;  %v1875_v51 = vpack.c.bf16 %v1210_v19, %v1201_v63 }
 0x168   : > { %v542_v32 = vpop.permute.xlu1 %541  ;;  %v2587_v47 = vpop.permute.xlu0 %480 }
 0x169   : > { %v554_v17 = vsel %vm547_vm5, %v2441_v34, %v542_v32  ;;  %v492_v45 = vsel %vm484_vm4, %v479_v3, %v2587_v47  ;;  %v1211_v49 = vld [vmem:[#allocation2 + $0x220] sm:$0xff] }
 0x16a   : > { %572 = vst [vmem:[#allocation2 + $0x108] sm:$0xf] %v554_v17  ;;  %510 = vst [vmem:[#allocation2 + $0xc8] sm:$0xf0] %v492_v45  ;;  %v1873_v23 = vpack.c.bf16 %v1211_v49, %v1202_v55 }
 0x16c   : > { %v605_v61 = vpop.permute.xlu1 %604  ;;  %v2593_v8 = vpop.permute.xlu0 %543  ;;  %1874 = vmatprep.subr.bf16.mxu0 %v1873_v23 }
 0x16d   : > { %v617_v53 = vsel %vm610_vm6, %v2450_v38, %v605_v61  ;;  %v555_v34 = vsel %vm547_vm5, %v542_v32, %v2593_v8  ;;  %1876 = vmatpush1.bf16.msra.mxu0 %v1875_v51  ;;  %v1167_v48 = vld [vmem:[#allocation2 + $0xc0] sm:$0xff] }
 0x16e   : > { %635 = vst [vmem:[#allocation2 + $0x108] sm:$0xf0] %v617_v53  ;;  %573 = vst [vmem:[#allocation2 + $0x110] sm:$0xf] %v555_v34  ;;  %1893 = vmatprep.subr.bf16.mxu0 %v1970_v6 }
 0x170   : > { %v231_v35 = vpop.permute.xlu1 %230  ;;  %v607_v56 = vpop.permute.xlu0 %606  ;;  %1795 = vmatmul.mubr.msk.f32.vlgmr.msra.gmra.mrb[2].mxu0 %vm1215_vm15, %v2379_v12 }
 0x171   : > { %v241_v57 = vsel %vm232_vm2, %v2540_v54, %v231_v35  ;;  %v618_v29 = vsel %vm610_vm6, %v605_v61, %v607_v56  ;;  %1826 = vmatprep.mubr.msk.f32.mxu0 %vm1971_vm14, %v1969_v11  ;;  %v1168_v4 = vld [vmem:[#allocation2 + $0xc8] sm:$0xff] }
 0x172   : > { %259 = vst [vmem:[#allocation2 + $0x40] sm:$0xf0] %v241_v57  ;;  %636 = vst [vmem:[#allocation2 + $0x110] sm:$0xf0] %v618_v29 }
 0x174   : > { %v357_v38 = vpop.permute.xlu1 %356  ;;  %v294_v59 = vpop.permute.xlu0 %293 }
 0x175   : > { %v367_v41 = vsel %vm358_vm1, %v2552_v13, %v357_v38  ;;  %v304_v60 = vsel %vm295_vm0, %v2546_v7, %v294_v59  ;;  %v1176_v62 = vld [vmem:[#allocation2 + $0x108] sm:$0xff]  ;;  %vm2706_vm0 = vcmask 162816  }
 0x176   : > { %385 = vst [vmem:[#allocation2 + $0x88] sm:$0xf0] %v367_v41  ;;  %322 = vst [vmem:[#allocation2 + $0x88] sm:$0xf] %v304_v60  ;;  %v1883_v40 = vpack.c.bf16 %v1176_v62, %v1167_v48 }
 0x177   : > { %vm2707_vm1 = vmmov %vm2706_vm0 }
 0x178   : > { %v2610_v33 = vpop.permute.xlu1 %669  ;;  %v668_v54 = vpop.permute.xlu0 %667  ;;  %vm2708_vm2 = vmmov %vm2706_vm0 }
 0x179   : > { %v680_v15 = vsel %vm673_vm7, %v2487_v1, %v668_v54  ;;  %v681_v11 = vsel %vm673_vm7, %v668_v54, %v2610_v33  ;;  %v1177_v14 = vld [vmem:[#allocation2 + $0x110] sm:$0xff]  ;;  %v1151_v22 = vld [vmem:[#allocation2 + $0x40] sm:$0xff] }
 0x17a   : > { %698 = vst [vmem:[#allocation2 + $0x150] sm:$0xf] %v680_v15  ;;  %699 = vst [vmem:[#allocation2 + $0x158] sm:$0xf] %v681_v11  ;;  %v1881_v13 = vpack.c.bf16 %v1177_v14, %v1168_v4 }
 0x17c   : > { %v2616_v7 = vpop.permute.xlu1 %732  ;;  %v731_v20 = vpop.permute.xlu0 %730  ;;  %1882 = vmatprep.subr.bf16.mxu1 %v1881_v13 }
 0x17d   : > { %v743_v21 = vsel %vm736_vm8, %v2496_v16, %v731_v20  ;;  %v744_v1 = vsel %vm736_vm8, %v731_v20, %v2616_v7  ;;  %1884 = vmatpush1.bf16.msra.mxu1 %v1883_v40  ;;  %v1160_v0 = vld [vmem:[#allocation2 + $0x88] sm:$0xff] }
 0x17e   : > { %761 = vst [vmem:[#allocation2 + $0x150] sm:$0xf0] %v743_v21  ;;  %762 = vst [vmem:[#allocation2 + $0x158] sm:$0xf0] %v744_v1  ;;  %v1894_v24 = vpack.c.bf16 %v1160_v0, %v1151_v22 }
 0x180   : > { %v2622_v25 = vpop.permute.xlu1 %795  ;;  %v794_v27 = vpop.permute.xlu0 %793  ;;  %1895 = vmatpush3.bf16.msra.mxu0 %v1894_v24 }
 0x181   : > { %v806_v5 = vsel %vm799_vm9, %v2505_v26, %v794_v27  ;;  %v807_v28 = vsel %vm799_vm9, %v794_v27, %v2622_v25  ;;  %1896 = vmatprep.subr.bf16.mxu0 %v1970_v6 }
 0x182   : > { %824 = vst [vmem:[#allocation2 + $0x198] sm:$0xf] %v806_v5  ;;  %825 = vst [vmem:[#allocation2 + $0x1a0] sm:$0xf] %v807_v28 }
 0x184   : > { %v2629_v16 = vpop.permute.xlu1 %858  ;;  %v857_v31 = vpop.permute.xlu0 %856 }
 0x185   : > { %v869_v2 = vsel %vm862_vm10, %v2514_v30, %v857_v31  ;;  %v870_v18 = vsel %vm862_vm10, %v857_v31, %v2629_v16  ;;  %v1186_v3 = vld [vmem:[#allocation2 + $0x158] sm:$0xff]  ;;  %v1185_v32 = vld [vmem:[#allocation2 + $0x150] sm:$0xff] }
 0x186   : > { %887 = vst [vmem:[#allocation2 + $0x198] sm:$0xf0] %v869_v2  ;;  %888 = vst [vmem:[#allocation2 + $0x1a0] sm:$0xf0] %v870_v18  ;;  %v1577_v18 = vlaneseq }
 0x188   : > { %v483_v37 = vpop.permute.xlu1 %482  ;;  %v420_v26 = vpop.permute.xlu0 %419 }
 0x189   : > { %v493_v10 = vsel %vm484_vm4, %v2587_v47, %v483_v37  ;;  %v430_v50 = vsel %vm421_vm3, %v2581_v46, %v420_v26  ;;  %v1578_v37 = vshrl.u32 %v1577_v18, 7 }
 0x18a   : > { %511 = vst [vmem:[#allocation2 + $0xd0] sm:$0xf0] %v493_v10  ;;  %448 = vst [vmem:[#allocation2 + $0xd0] sm:$0xf] %v430_v50  ;;  %v1573_v10 = vld [vmem:[%s2703_s2] sm:$0xff] }
 0x18b   : > { %v1579_v26 = vsub.s32 0, %v1578_v37  ;;  %v1583_v50 = vsub.s32 1, %v1578_v37 }
 0x18c   : > { %v609_v42 = vpop.permute.xlu1 %608  ;;  %v546_v43 = vpop.permute.xlu0 %545 }
 0x18d   : > { %v619_v30 = vsel %vm610_vm6, %v607_v56, %v609_v42  ;;  %v556_v52 = vsel %vm547_vm5, %v2593_v8, %v546_v43  ;;  %v1195_v58 = vld [vmem:[#allocation2 + $0x1a0] sm:$0xff]  ;;  %v1194_v19 = vld [vmem:[#allocation2 + $0x198] sm:$0xff]  ;;  %v1580_v42 = vrot.slane %v1573_v10, %v1579_v26  ;;  %v1584_v43 = vrot.slane %v1573_v10, %v1583_v50 }
 0x18e   : > { %637 = vst [vmem:[#allocation2 + $0x118] sm:$0xf0] %v619_v30  ;;  %574 = vst [vmem:[#allocation2 + $0x118] sm:$0xf] %v556_v52  ;;  %v1885_v17 = vpack.c.bf16 %v1195_v58, %v1186_v3  ;;  %v1887_v47 = vpack.c.bf16 %v1194_v19, %v1185_v32 }
 0x190   : > { %v922_v45 = vpop.permute.xlu1 %921  ;;  %v920_v55 = vpop.permute.xlu0 %919  ;;  %1886 = vmatprep.subr.bf16.mxu1 %v1885_v17  ;;  %v1587_v17 = vsub.s32 2, %v1578_v37 }
 0x191   : > { %v932_v46 = vsel %vm925_vm11, %v2557_v44, %v920_v55  ;;  %v933_v49 = vsel %vm925_vm11, %v920_v55, %v922_v45  ;;  %1888 = vmatpush1.bf16.msra.mxu1 %v1887_v47  ;;  %v1169_v8 = vld [vmem:[#allocation2 + $0xd0] sm:$0xff]  ;;  %v1591_v47 = vsub.s32 3, %v1578_v37 }
 0x192   : > { %950 = vst [vmem:[#allocation2 + $0x1e0] sm:$0xf] %v932_v46  ;;  %951 = vst [vmem:[#allocation2 + $0x1e8] sm:$0xf] %v933_v49 }
 0x193   : > { %v1592_v55 = vrot.slane %v1573_v10, %v1591_v47 }
 0x194   : > { %v985_v23 = vpop.permute.xlu1 %984  ;;  %v983_v63 = vpop.permute.xlu0 %982 }
 0x195   : > { %v995_v51 = vsel %vm988_vm12, %v2565_v9, %v983_v63  ;;  %v996_v61 = vsel %vm988_vm12, %v983_v63, %v985_v23  ;;  %v1178_v53 = vld [vmem:[#allocation2 + $0x118] sm:$0xff] }
 0x196   : > { %1013 = vst [vmem:[#allocation2 + $0x1e0] sm:$0xf0] %v995_v51  ;;  %1014 = vst [vmem:[#allocation2 + $0x1e8] sm:$0xf0] %v996_v61  ;;  %v1897_v34 = vpack.c.bf16 %v1178_v53, %v1169_v8 }
 0x198   : > { %v1048_v35 = vpop.permute.xlu1 %1047  ;;  %v1046_v56 = vpop.permute.xlu0 %1045  ;;  %1898 = vmatpush3.bf16.msra.mxu0 %v1897_v34 }
 0x199   : > { %v1058_v44 = vsel %vm1051_vm13, %v2570_v36, %v1046_v56  ;;  %v1059_v57 = vsel %vm1051_vm13, %v1046_v56, %v1048_v35  ;;  %1899 = vmatprep.subr.bf16.mxu0 %v1970_v6  ;;  %v1595_v56 = vsub.s32 4, %v1578_v37 }
 0x19a   : > { %1076 = vst [vmem:[#allocation2 + $0x228] sm:$0xf] %v1058_v44  ;;  %1077 = vst [vmem:[#allocation2 + $0x230] sm:$0xf] %v1059_v57  ;;  %v1599_v44 = vsub.s32 5, %v1578_v37 }
 0x19b   : > { %v1596_v57 = vrot.slane %v1573_v10, %v1595_v56 }
 0x19c   : > { %v1111_v9 = vpop.permute.xlu1 %1110  ;;  %v1109_v29 = vpop.permute.xlu0 %1108 }
 0x19d   : > { %v1121_v38 = vsel %vm2706_vm0, %v2575_v39, %v1109_v29  ;;  %v1122_v59 = vsel %vm2707_vm1, %v1109_v29, %v1111_v9  ;;  %v1204_v11 = vld [vmem:[#allocation2 + $0x1e8] sm:$0xff]  ;;  %v1203_v13 = vld [vmem:[#allocation2 + $0x1e0] sm:$0xff] }
 0x19e   : > { %1139 = vst [vmem:[#allocation2 + $0x228] sm:$0xf0] %v1121_v38  ;;  %1140 = vst [vmem:[#allocation2 + $0x230] sm:$0xf0] %v1122_v59 }
 0x1a0   : > { %v735_v41 = vpop.permute.xlu1 %734  ;;  %v672_v60 = vpop.permute.xlu0 %671 }
 0x1a1   : > { %v745_v36 = vsel %vm736_vm8, %v2616_v7, %v735_v41  ;;  %v682_v54 = vsel %vm673_vm7, %v2610_v33, %v672_v60 }
 0x1a2   : > { %763 = vst [vmem:[#allocation2 + $0x160] sm:$0xf0] %v745_v36  ;;  %700 = vst [vmem:[#allocation2 + $0x160] sm:$0xf] %v682_v54 }
 0x1a4   : > { %v861_v62 = vpop.permute.xlu1 %860  ;;  %v798_v15 = vpop.permute.xlu0 %797 }
 0x1a5   : > { %v871_v39 = vsel %vm862_vm10, %v2629_v16, %v861_v62  ;;  %v808_v4 = vsel %vm799_vm9, %v2622_v25, %v798_v15  ;;  %v1213_v14 = vld [vmem:[#allocation2 + $0x230] sm:$0xff]  ;;  %v1212_v48 = vld [vmem:[#allocation2 + $0x228] sm:$0xff] }
 0x1a6   : > { %889 = vst [vmem:[#allocation2 + $0x1a8] sm:$0xf0] %v871_v39  ;;  %826 = vst [vmem:[#allocation2 + $0x1a8] sm:$0xf] %v808_v4  ;;  %v1889_v40 = vpack.c.bf16 %v1213_v14, %v1204_v11  ;;  %v1891_v7 = vpack.c.bf16 %v1212_v48, %v1203_v13  ;;  %v1603_v39 = vsub.s32 6, %v1578_v37  ;;  %v1607_v4 = vsub.s32 7, %v1578_v37 }
 0x1a8   : > { %v987_v20 = vpop.permute.xlu1 %986  ;;  %v924_v33 = vpop.permute.xlu0 %923  ;;  %1890 = vmatprep.subr.bf16.mxu1 %v1889_v40  ;;  %v1604_v14 = vrot.slane %v1573_v10, %v1603_v39  ;;  %v1608_v13 = vrot.slane %v1573_v10, %v1607_v4 }
 0x1a9   : > { %v997_v21 = vsel %vm988_vm12, %v985_v23, %v987_v20  ;;  %v934_v1 = vsel %vm925_vm11, %v922_v45, %v924_v33  ;;  %1892 = vmatpush1.bf16.msra.mxu1 %v1891_v7  ;;  %v1187_v27 = vld [vmem:[#allocation2 + $0x160] sm:$0xff]  ;;  %v1588_v45 = vrot.slane %v1573_v10, %v1587_v17 }
 0x1aa   : > { %1015 = vst [vmem:[#allocation2 + $0x1f0] sm:$0xf0] %v997_v21  ;;  %952 = vst [vmem:[#allocation2 + $0x1f0] sm:$0xf] %v934_v1 }
 0x1ac   : > { %v1113_v22 = vpop.permute.xlu1 %1112  ;;  %v1050_v0 = vpop.permute.xlu0 %1049  ;;  %1796 = vmatmul.mubr.msk.f32.vlgmr.msra.gmra.mrb[2].mxu1 %vm1215_vm15, %v2379_v12 }
 0x1ad   : > { %v1123_v24 = vsel %vm2708_vm2, %v1111_v9, %v1113_v22  ;;  %v1060_v25 = vsel %vm1051_vm13, %v1048_v35, %v1050_v0  ;;  %v1196_v5 = vld [vmem:[#allocation2 + $0x1a8] sm:$0xff]  ;;  %v1600_v9 = vrot.slane %v1573_v10, %v1599_v44 }
 0x1ae   : > { %1141 = vst [vmem:[#allocation2 + $0x238] sm:$0xf0] %v1123_v24  ;;  %1078 = vst [vmem:[#allocation2 + $0x238] sm:$0xf] %v1060_v25  ;;  %v1900_v28 = vpack.c.bf16 %v1196_v5, %v1187_v27  ;;  %v1798_v25 = vld [vmem:[%s2703_s2 + $0x8] ss:$0 sm:$0xff] }
 0x1b0   : > { %1901 = vmatpush3.bf16.msra.mxu0 %v1900_v28 }
 0x1b1   : > { %1902 = vmatprep.subr.bf16.mxu0 %v1970_v6  ;;  %v1205_v16 = vld [vmem:[#allocation2 + $0x1f0] sm:$0xff] }
 0x1b5   : > { %v1214_v31 = vld [vmem:[#allocation2 + $0x238] sm:$0xff] }
 0x1b6   : > { %v1903_v2 = vpack.c.bf16 %v1214_v31, %v1205_v16 }
 0x1b8   : > { %1904 = vmatpush3.bf16.msra.mxu0 %v1903_v2 }
 0x1bb   : > { %1827 = vmatmul.mubr.msk.f32.vlgmr.msra.gmra.mrb[4].mxu0 %vm1215_vm15, %v2379_v12 }
 0x1ca   : > { %v2675_v3 = vpop.f32.mrb[0].mxu0 }
 0x1cb   : > { %v1622_v6 = vmul.f32 %v1580_v42, %v2675_v3  ;;  %v2678_v30 = vpop.f32.mrb[1].mxu0 }
 0x1cc   : > { %v1623_v52 = vmul.f32 %v1584_v43, %v2678_v30 }
 0x1cd   : > { %v1642_v58 = vmul.f32 %v1622_v6, %v1622_v6 }
 0x1ce   : > { %v1631_v12 = vadd.f32 %v1623_v52, %v1622_v6  ;;  %v1643_v32 = vmul.f32 %v1623_v52, %v1623_v52 }
 0x1d0   : > { %v1651_v19 = vadd.f32 %v1643_v32, %v1642_v58 }
 0x227   : > { %v2681_v46 = vpop.f32.mrb[0].mxu1 }
 0x228   : > { %v1624_v49 = vmul.f32 %v1588_v45, %v2681_v46  ;;  %v2684_v23 = vpop.f32.mrb[1].mxu1 }
 0x229   : > { %v1625_v63 = vmul.f32 %v1592_v55, %v2684_v23 }
 0x22a   : > { %v1632_v51 = vadd.f32 %v1631_v12, %v1624_v49  ;;  %v1644_v61 = vmul.f32 %v1624_v49, %v1624_v49 }
 0x22b   : > { %v1645_v8 = vmul.f32 %v1625_v63, %v1625_v63 }
 0x22c   : > { %v1652_v53 = vadd.f32 %v1651_v19, %v1644_v61  ;;  %v1633_v34 = vadd.f32 %v1632_v51, %v1625_v63 }
 0x22e   : > { %v1653_v35 = vadd.f32 %v1652_v53, %v1645_v8 }
 0x243   : > { %v1427_v29 = vpop.f32.mrb[2].mxu0 }
 0x244   : > { %v1626_v38 = vmul.f32 %v1596_v57, %v1427_v29  ;;  %v1429_v59 = vpop.f32.mrb[3].mxu0 }
 0x245   : > { %v1627_v41 = vmul.f32 %v1600_v9, %v1429_v59 }
 0x246   : > { %v1634_v60 = vadd.f32 %v1633_v34, %v1626_v38  ;;  %v1646_v36 = vmul.f32 %v1626_v38, %v1626_v38 }
 0x247   : > { %v1647_v54 = vmul.f32 %v1627_v41, %v1627_v41 }
 0x248   : > { %v1654_v62 = vadd.f32 %v1653_v35, %v1646_v36  ;;  %v1635_v15 = vadd.f32 %v1634_v60, %v1627_v41 }
 0x24a   : > { %v1655_v11 = vadd.f32 %v1654_v62, %v1647_v54 }
 0x27f   : > { %v1498_v48 = vpop.f32.mrb[2].mxu1 }
 0x280   : > { %v1628_v40 = vmul.f32 %v1604_v14, %v1498_v48  ;;  %v1500_v7 = vpop.f32.mrb[3].mxu1 }
 0x281   : > { %v1629_v20 = vmul.f32 %v1608_v13, %v1500_v7 }
 0x282   : > { %v1636_v33 = vadd.f32 %v1635_v15, %v1628_v40  ;;  %v1648_v21 = vmul.f32 %v1628_v40, %v1628_v40 }
 0x283   : > { %v1649_v1 = vmul.f32 %v1629_v20, %v1629_v20 }
 0x284   : > { %v1656_v22 = vadd.f32 %v1655_v11, %v1648_v21  ;;  %v1637_v0 = vadd.f32 %v1636_v33, %v1629_v20 }
 0x286   : > { %v1657_v24 = vadd.f32 %v1656_v22, %v1649_v1 }
 0x28e   : > { %v1569_v27 = vpop.f32.mrb[4].mxu0 }
 0x28f   : > { %v1630_v5 = vmul.f32 %v1798_v25, %v1569_v27  ;;  %v1828_v28 = vpop.f32.mrb[5].mxu0 }
 0x291   : > { %v1638_v16 = vadd.f32 %v1637_v0, %v1630_v5  ;;  %v1650_v31 = vmul.f32 %v1630_v5, %v1630_v5 }
 0x293   : > { %1639 = vadd.xlane.f32.xlu0 %v1638_v16  ;;  %v1658_v2 = vadd.f32 %v1657_v24, %v1650_v31 }
 0x295   : > { %1659 = vadd.xlane.f32.xlu1 %v1658_v2 }
 0x320   : > { %v1640_v18 = vpop.xlane.xlu0 %1639 }
 0x321   : > { %v1671_v37 = vmul.f32 0.0009765625, %v1640_v18 }
 0x322   : > { %v1660_v26 = vpop.xlane.xlu1 %1659 }
 0x323   : > { %v1672_v10 = vmul.f32 0.0009765625, %v1660_v26  ;;  %v1673_v50 = vmul.f32 %v1671_v37, %v1671_v37  ;;  %v1686_v6 = vsub.f32 %v2675_v3, %v1671_v37  ;;  %v1687_v52 = vsub.f32 %v2678_v30, %v1671_v37 }
 0x324   : > { %v1688_v58 = vsub.f32 %v2681_v46, %v1671_v37  ;;  %v1689_v12 = vsub.f32 %v2684_v23, %v1671_v37  ;;  %v1690_v32 = vsub.f32 %v1427_v29, %v1671_v37  ;;  %v1691_v17 = vsub.f32 %v1429_v59, %v1671_v37 }
 0x325   : > { %v1674_v42 = vsub.f32 %v1672_v10, %v1673_v50  ;;  %v1692_v47 = vsub.f32 %v1498_v48, %v1671_v37  ;;  %v1693_v45 = vsub.f32 %v1500_v7, %v1671_v37  ;;  %v1694_v55 = vsub.f32 %v1569_v27, %v1671_v37 }
 0x327   : > { %v1675_v43 = vadd.f32 1e-05, %v1674_v42 }
 0x329   : > { %1944 = vrsqrt.f32 %v1675_v43 }
 0x333   : > { %v1945_v19 = vpop.eup %1944 }
 0x334   : > { %v1695_v49 = vmul.f32 %v1945_v19, %v1686_v6  ;;  %v1696_v63 = vmul.f32 %v1945_v19, %v1687_v52  ;;  %v1697_v51 = vmul.f32 %v1945_v19, %v1688_v58  ;;  %v1698_v61 = vmul.f32 %v1945_v19, %v1689_v12 }
 0x335   : > { %v1699_v8 = vmul.f32 %v1945_v19, %v1690_v32  ;;  %v1700_v53 = vmul.f32 %v1945_v19, %v1691_v17  ;;  %v1701_v3 = vmul.f32 %v1945_v19, %v1692_v47  ;;  %v1702_v34 = vmul.f32 %v1945_v19, %v1693_v45 }
 0x336   : > { %v1703_v30 = vmul.f32 %v1945_v19, %v1694_v55  ;;  %v1704_v35 = vmul.f32 0.2, %v1695_v49  ;;  %v1705_v46 = vmul.f32 0.2, %v1696_v63  ;;  %v1706_v56 = vmul.f32 0.2, %v1697_v51 }
 0x337   : > { %v1707_v23 = vmul.f32 0.2, %v1698_v61  ;;  %v1708_v44 = vmul.f32 0.2, %v1699_v8  ;;  %v1709_v57 = vmul.f32 0.2, %v1700_v53 }
 0x338   : > { %v1710_v9 = vmul.f32 0.2, %v1701_v3  ;;  %v1711_v29 = vmul.f32 0.2, %v1702_v34  ;;  %v1712_v38 = vmul.f32 0.2, %v1703_v30  ;;  %v1713_v59 = vmax.f32 %v1695_v49, %v1704_v35 }
 0x339   : > { %v1714_v41 = vmax.f32 %v1696_v63, %v1705_v46  ;;  %v1715_v60 = vmax.f32 %v1697_v51, %v1706_v56  ;;  %v1716_v36 = vmax.f32 %v1698_v61, %v1707_v23  ;;  %v1717_v54 = vmax.f32 %v1699_v8, %v1708_v44 }
 0x33a   : > { %v1718_v62 = vmax.f32 %v1700_v53, %v1709_v57  ;;  %v1719_v15 = vmax.f32 %v1701_v3, %v1710_v9  ;;  %v1720_v11 = vmax.f32 %v1702_v34, %v1711_v29  ;;  %v1721_v39 = vmax.f32 %v1703_v30, %v1712_v38  ;;  %1722 = vst [vmem:[%s170_s13] sm:$0xff] %v1713_v59 }
 0x33b   : > { %1723 = vst [vmem:[%s170_s13 + $0x8] sm:$0xff] %v1714_v41  ;;  %1724 = vst [vmem:[%s170_s13 + $0x10] sm:$0xff] %v1715_v60 }
 0x33c   : > { %1725 = vst [vmem:[%s170_s13 + $0x18] sm:$0xff] %v1716_v36  ;;  %1726 = vst [vmem:[%s170_s13 + $0x20] sm:$0xff] %v1717_v54 }
 0x33d   : > { %1727 = vst [vmem:[%s170_s13 + $0x28] sm:$0xff] %v1718_v62  ;;  %1728 = vst [vmem:[%s170_s13 + $0x30] sm:$0xff] %v1719_v15 }
 0x33e   : > { %1729 = vst [vmem:[%s170_s13 + $0x38] sm:$0xff] %v1720_v11  ;;  %1730 = vst [vmem:[%s170_s13 + $0x40] sm:$0xff] %v1721_v39 }
 0x33f PF: > { %s13_s12 = sadd.s32 1, %s1952_s12  }
 0x340   : > { %p10_p4 = scmp.ge.s32.totalorder %s13_s12, 4  }
 0x342   :  { %12 = sbr.rel (!%p10_p4) target bundleno = 1 (0x1), region = 62 }

</bundles_post_ra>
